<compile_context>
chip_gen: v5e
topology: v5e:2x2
jax: 0.10.0
libtpu: 0.0.40
codegen_flags: <defaults>
</compile_context>

<pallas_src>
import functools

import jax
import jax.numpy as jnp
from jax import lax
from jax.experimental import pallas as pl
from jax.experimental.pallas import tpu as pltpu


def _round_up(v, m):
    return (v + m - 1) // m * m


def lstm_last_kernel(x_ref, w_ih_ref, w_hh_ref, w_out_ref, y_ref, xw_ref,
                     *, seq_len, batch_pad):
    """Fused LSTM recurrence + last-step Linear.

    x_ref    : (T*Bp, I)   time-major, batch-padded, flattened input
    w_ih_ref : (I,  4*Hp)  fused/padded input->gate weights  [i|f|g|o]
    w_hh_ref : (Hp, 4*Hp)  fused/padded hidden->gate weights [i|f|g|o]
    w_out_ref: (Hp, O)     final projection (torch Linear.weight^T, padded)
    y_ref    : (Bp, O)     output
    xw_ref   : (T*Bp, 4*Hp) VMEM scratch for the hoisted input projection
    """
    T = seq_len
    Bp = batch_pad
    Hp4 = w_hh_ref.shape[1]
    Hp = Hp4 // 4

    # Input projection hoisted off the serial critical path: one fused matmul
    # covering every time step (it does not depend on the recurrent carry).
    xw_ref[...] = jnp.dot(x_ref[...], w_ih_ref[...],
                          preferred_element_type=jnp.float32)

    # Recurrent weight loaded once as a single contiguous lane-dense operand.
    w_hh = w_hh_ref[...]

    h0 = jnp.zeros((Bp, Hp), jnp.float32)
    c0 = jnp.zeros((Bp, Hp), jnp.float32)

    def step(t, carry):
        h, c = carry
        row = pl.multiple_of(t * Bp, Bp)            # sublane-aligned (Bp % 8 == 0)
        xw_t = xw_ref[pl.ds(row, Bp), :]            # (Bp, 4Hp)
        # Single fused gate matmul per step: 1 MXU push instead of 8.
        gates = xw_t + jnp.dot(h, w_hh, preferred_element_type=jnp.float32)
        i_g = jax.nn.sigmoid(gates[:, 0 * Hp:1 * Hp])
        f_g = jax.nn.sigmoid(gates[:, 1 * Hp:2 * Hp])
        g_g = jnp.tanh(gates[:, 2 * Hp:3 * Hp])
        o_g = jax.nn.sigmoid(gates[:, 3 * Hp:4 * Hp])
        c_new = f_g * c + i_g * g_g
        h_new = o_g * jnp.tanh(c_new)
        return (h_new, c_new)

    # T is static and small: fully unroll so the scheduler can overlap the
    # pointwise gate tail of step t with the MXU work of step t+1.
    h_last, _ = lax.fori_loop(0, T, step, (h0, c0), unroll=True)

    # SelectLastStep + Linear(no bias).
    y_ref[...] = jnp.dot(h_last, w_out_ref[...],
                         preferred_element_type=jnp.float32).astype(y_ref.dtype)


def lstm_forward(x_btd, w_ih, w_hh, w_out):
    """x_btd: (B, T, I) batch_first like PyTorch; returns (B, O).

    w_ih : (4, I, H)  gate order [i, f, g, o]  (== torch W_ih^T split)
    w_hh : (4, H, H)                           (== torch W_hh^T split)
    w_out: (H, O)                              (== torch Linear.weight^T)
    """
    B, T, I = x_btd.shape
    H = w_hh.shape[2]
    O = w_out.shape[1]

    Hp = _round_up(H, 128)   # lane-aligned hidden size
    Bp = _round_up(B, 8)     # sublane-aligned batch

    def fuse_pad(w, rows, rows_pad):
        # (4, rows, H) -> zero-padded (rows_pad, 4*Hp), gate-major columns.
        w_p = jnp.zeros((4, rows_pad, Hp), jnp.float32).at[:, :rows, :H].set(w)
        return jnp.transpose(w_p, (1, 0, 2)).reshape(rows_pad, 4 * Hp)

    w_ih_f = fuse_pad(w_ih.astype(jnp.float32), I, I)     # (I,  4Hp)
    w_hh_f = fuse_pad(w_hh.astype(jnp.float32), H, Hp)    # (Hp, 4Hp)
    w_out_p = jnp.zeros((Hp, O), jnp.float32).at[:H, :].set(w_out)  # (Hp, O)

    # Time-major, batch padded, flattened so the kernel can do one fused
    # (T*Bp, I) @ (I, 4Hp) input projection.
    x_tbi = jnp.transpose(x_btd.astype(jnp.float32), (1, 0, 2))  # (T, B, I)
    x_pad = jnp.zeros((T, Bp, I), jnp.float32).at[:, :B, :].set(x_tbi)
    x2d = x_pad.reshape(T * Bp, I)

    flops = (2 * T * Bp * I * 4 * Hp          # hoisted input projection
             + 2 * T * Bp * Hp * 4 * Hp       # recurrent gate matmuls
             + 2 * Bp * Hp * O)               # final Linear
    transcendentals = 5 * T * Bp * Hp         # 3 sigmoid + 2 tanh per step
    bytes_accessed = 4 * (x2d.size + w_ih_f.size + w_hh_f.size
                          + w_out_p.size + Bp * O)

    kernel = functools.partial(lstm_last_kernel, seq_len=T, batch_pad=Bp)

    y_pad = pl.pallas_call(
        kernel,
        out_shape=jax.ShapeDtypeStruct((Bp, O), jnp.float32),
        in_specs=[
            pl.BlockSpec(memory_space=pltpu.MemorySpace.VMEM),  # x2d
            pl.BlockSpec(memory_space=pltpu.MemorySpace.VMEM),  # w_ih_f
            pl.BlockSpec(memory_space=pltpu.MemorySpace.VMEM),  # w_hh_f
            pl.BlockSpec(memory_space=pltpu.MemorySpace.VMEM),  # w_out_p
        ],
        out_specs=pl.BlockSpec(memory_space=pltpu.MemorySpace.VMEM),
        scratch_shapes=[pltpu.VMEM((T * Bp, 4 * Hp), jnp.float32)],
        cost_estimate=pl.CostEstimate(
            flops=flops,
            transcendentals=transcendentals,
            bytes_accessed=bytes_accessed),
    )(x2d, w_ih_f, w_hh_f, w_out_p)

    return y_pad[:B]


def lstm_forward_ref(x_btd, w_ih, w_hh, w_out):
    """Pure-JAX reference (same math as torch nn.LSTM + Linear, no bias)."""
    B, T, I = x_btd.shape
    H = w_hh.shape[2]
    h = jnp.zeros((B, H), jnp.float32)
    c = jnp.zeros((B, H), jnp.float32)
    for t in range(T):
        x_t = x_btd[:, t, :]
        i_g = jax.nn.sigmoid(x_t @ w_ih[0] + h @ w_hh[0])
        f_g = jax.nn.sigmoid(x_t @ w_ih[1] + h @ w_hh[1])
        g_g = jnp.tanh(x_t @ w_ih[2] + h @ w_hh[2])
        o_g = jax.nn.sigmoid(x_t @ w_ih[3] + h @ w_hh[3])
        c = f_g * c + i_g * g_g
        h = o_g * jnp.tanh(c)
    return h @ w_out


if __name__ == "__main__":
    # Module defaults: input_size=1, hidden_size=100, num_layers=1, output_size=1
    B, T, I, H, O = 4, 8, 1, 100, 1

    key = jax.random.PRNGKey(0)
    k_x, k_ih, k_hh, k_out = jax.random.split(key, 4)

    bound = 1.0 / (H ** 0.5)  # PyTorch LSTM/Linear default uniform init range
    x = jax.random.normal(k_x, (B, T, I), dtype=jnp.float32)
    w_ih = jax.random.uniform(k_ih, (4, I, H), jnp.float32, -bound, bound)
    w_hh = jax.random.uniform(k_hh, (4, H, H), jnp.float32, -bound, bound)
    w_out = jax.random.uniform(k_out, (H, O), jnp.float32, -bound, bound)

    y = lstm_forward(x, w_ih, w_hh, w_out)
    jax.block_until_ready(y)

    y_ref = lstm_forward_ref(x, w_ih, w_hh, w_out)
    assert y.shape == (B, O)
    assert jnp.allclose(y, y_ref, atol=1e-5, rtol=1e-5), "mismatch vs reference"

    print("KERNEL_OK")
</pallas_src>

<mosaic_0001>
module attributes {stable_mosaic.version = 11 : i64} {
  func.func @lstm_last_kernel(%arg0: memref<64x1xf32, #tpu.memory_space<vmem>>, %arg1: memref<1x512xf32, #tpu.memory_space<vmem>>, %arg2: memref<128x512xf32, #tpu.memory_space<vmem>>, %arg3: memref<128x1xf32, #tpu.memory_space<vmem>>, %arg4: memref<8x1xf32, #tpu.memory_space<vmem>>, %arg5: memref<64x512xf32, #tpu.memory_space<vmem>>) attributes {dimension_semantics = [], scalar_prefetch = 0 : i64, scratch_operands = 1 : i64, tpu.core_type = #tpu.core_type<tc>} {
    %c0 = arith.constant 0 : index
    %c0_0 = arith.constant 0 : index
    %0 = vector.load %arg0[%c0, %c0_0] : memref<64x1xf32, #tpu.memory_space<vmem>>, vector<64x1xf32>
    %c0_1 = arith.constant 0 : index
    %c0_2 = arith.constant 0 : index
    %1 = vector.load %arg1[%c0_1, %c0_2] : memref<1x512xf32, #tpu.memory_space<vmem>>, vector<1x512xf32>
    %cst = arith.constant dense<0.000000e+00> : vector<64x512xf32>
    %2 = tpu.matmul %0, %1, %cst {dimension_numbers = #tpu.dot_dimension_numbers<[1], [0], [0], [1], [0, 0, 1, 1], [], []>} : vector<64x1xf32>, vector<1x512xf32>, vector<64x512xf32> -> vector<64x512xf32>
    %c0_3 = arith.constant 0 : index
    %c0_4 = arith.constant 0 : index
    %3 = vector.load %arg5[%c0_3, %c0_4] : memref<64x512xf32, #tpu.memory_space<vmem>>, vector<64x512xf32>
    tpu.vector_store %arg5[%c0_3, %c0_4], %2 {strides = array<i32>} : memref<64x512xf32, #tpu.memory_space<vmem>>, vector<64x512xf32>,
    %c0_5 = arith.constant 0 : index
    %c0_6 = arith.constant 0 : index
    %4 = vector.load %arg2[%c0_5, %c0_6] : memref<128x512xf32, #tpu.memory_space<vmem>>, vector<128x512xf32>
    %cst_7 = arith.constant 0.000000e+00 : f32
    %5 = vector.broadcast %cst_7 : f32 to vector<8x128xf32>
    %cst_8 = arith.constant 0.000000e+00 : f32
    %6 = vector.broadcast %cst_8 : f32 to vector<8x128xf32>
    %c0_i32 = arith.constant 0 : i32
    %c8_i32 = arith.constant 8 : i32
    %7 = arith.muli %c0_i32, %c8_i32 : i32
    %8 = tpu.assume_multiple %7, 8 : i32
    %9 = arith.index_cast %8 : i32 to index
    %c0_9 = arith.constant 0 : index
    %10 = vector.load %arg5[%9, %c0_9] : memref<64x512xf32, #tpu.memory_space<vmem>>, vector<8x512xf32>
    %cst_10 = arith.constant dense<0.000000e+00> : vector<8x512xf32>
    %11 = tpu.matmul %5, %4, %cst_10 {dimension_numbers = #tpu.dot_dimension_numbers<[1], [0], [0], [1], [0, 0, 1, 1], [], []>} : vector<8x128xf32>, vector<128x512xf32>, vector<8x512xf32> -> vector<8x512xf32>
    %12 = arith.addf %10, %11 : vector<8x512xf32>
    %13 = vector.extract_strided_slice %12 {offsets = [0, 0], sizes = [8, 128], strides = [1, 1]} : vector<8x512xf32> to vector<8x128xf32>
    %14 = arith.negf %13 : vector<8x128xf32>
    %15 = math.exp %14 : vector<8x128xf32>
    %cst_11 = arith.constant 1.000000e+00 : f32
    %16 = vector.broadcast %cst_11 : f32 to vector<8x128xf32>
    %17 = arith.addf %16, %15 : vector<8x128xf32>
    %18 = arith.divf %16, %17 : vector<8x128xf32>
    %19 = vector.extract_strided_slice %12 {offsets = [0, 128], sizes = [8, 128], strides = [1, 1]} : vector<8x512xf32> to vector<8x128xf32>
    %20 = arith.negf %19 : vector<8x128xf32>
    %21 = math.exp %20 : vector<8x128xf32>
    %cst_12 = arith.constant 1.000000e+00 : f32
    %22 = vector.broadcast %cst_12 : f32 to vector<8x128xf32>
    %23 = arith.addf %22, %21 : vector<8x128xf32>
    %24 = arith.divf %22, %23 : vector<8x128xf32>
    %25 = vector.extract_strided_slice %12 {offsets = [0, 256], sizes = [8, 128], strides = [1, 1]} : vector<8x512xf32> to vector<8x128xf32>
    %26 = math.tanh %25 : vector<8x128xf32>
    %27 = vector.extract_strided_slice %12 {offsets = [0, 384], sizes = [8, 128], strides = [1, 1]} : vector<8x512xf32> to vector<8x128xf32>
    %28 = arith.negf %27 : vector<8x128xf32>
    %29 = math.exp %28 : vector<8x128xf32>
    %cst_13 = arith.constant 1.000000e+00 : f32
    %30 = vector.broadcast %cst_13 : f32 to vector<8x128xf32>
    %31 = arith.addf %30, %29 : vector<8x128xf32>
    %32 = arith.divf %30, %31 : vector<8x128xf32>
    %33 = arith.mulf %24, %6 : vector<8x128xf32>
    %34 = arith.mulf %18, %26 : vector<8x128xf32>
    %35 = arith.addf %33, %34 : vector<8x128xf32>
    %36 = math.tanh %35 : vector<8x128xf32>
    %37 = arith.mulf %32, %36 : vector<8x128xf32>
    %c1_i32 = arith.constant 1 : i32
    %c8_i32_14 = arith.constant 8 : i32
    %38 = arith.muli %c1_i32, %c8_i32_14 : i32
    %39 = tpu.assume_multiple %38, 8 : i32
    %40 = arith.index_cast %39 : i32 to index
    %c0_15 = arith.constant 0 : index
    %41 = vector.load %arg5[%40, %c0_15] : memref<64x512xf32, #tpu.memory_space<vmem>>, vector<8x512xf32>
    %cst_16 = arith.constant dense<0.000000e+00> : vector<8x512xf32>
    %42 = tpu.matmul %37, %4, %cst_16 {dimension_numbers = #tpu.dot_dimension_numbers<[1], [0], [0], [1], [0, 0, 1, 1], [], []>} : vector<8x128xf32>, vector<128x512xf32>, vector<8x512xf32> -> vector<8x512xf32>
    %43 = arith.addf %41, %42 : vector<8x512xf32>
    %44 = vector.extract_strided_slice %43 {offsets = [0, 0], sizes = [8, 128], strides = [1, 1]} : vector<8x512xf32> to vector<8x128xf32>
    %45 = arith.negf %44 : vector<8x128xf32>
    %46 = math.exp %45 : vector<8x128xf32>
    %cst_17 = arith.constant 1.000000e+00 : f32
    %47 = vector.broadcast %cst_17 : f32 to vector<8x128xf32>
    %48 = arith.addf %47, %46 : vector<8x128xf32>
    %49 = arith.divf %47, %48 : vector<8x128xf32>
    %50 = vector.extract_strided_slice %43 {offsets = [0, 128], sizes = [8, 128], strides = [1, 1]} : vector<8x512xf32> to vector<8x128xf32>
    %51 = arith.negf %50 : vector<8x128xf32>
    %52 = math.exp %51 : vector<8x128xf32>
    %cst_18 = arith.constant 1.000000e+00 : f32
    %53 = vector.broadcast %cst_18 : f32 to vector<8x128xf32>
    %54 = arith.addf %53, %52 : vector<8x128xf32>
    %55 = arith.divf %53, %54 : vector<8x128xf32>
    %56 = vector.extract_strided_slice %43 {offsets = [0, 256], sizes = [8, 128], strides = [1, 1]} : vector<8x512xf32> to vector<8x128xf32>
    %57 = math.tanh %56 : vector<8x128xf32>
    %58 = vector.extract_strided_slice %43 {offsets = [0, 384], sizes = [8, 128], strides = [1, 1]} : vector<8x512xf32> to vector<8x128xf32>
    %59 = arith.negf %58 : vector<8x128xf32>
    %60 = math.exp %59 : vector<8x128xf32>
    %cst_19 = arith.constant 1.000000e+00 : f32
    %61 = vector.broadcast %cst_19 : f32 to vector<8x128xf32>
    %62 = arith.addf %61, %60 : vector<8x128xf32>
    %63 = arith.divf %61, %62 : vector<8x128xf32>
    %64 = arith.mulf %55, %35 : vector<8x128xf32>
    %65 = arith.mulf %49, %57 : vector<8x128xf32>
    %66 = arith.addf %64, %65 : vector<8x128xf32>
    %67 = math.tanh %66 : vector<8x128xf32>
    %68 = arith.mulf %63, %67 : vector<8x128xf32>
    %c2_i32 = arith.constant 2 : i32
    %c8_i32_20 = arith.constant 8 : i32
    %69 = arith.muli %c2_i32, %c8_i32_20 : i32
    %70 = tpu.assume_multiple %69, 8 : i32
    %71 = arith.index_cast %70 : i32 to index
    %c0_21 = arith.constant 0 : index
    %72 = vector.load %arg5[%71, %c0_21] : memref<64x512xf32, #tpu.memory_space<vmem>>, vector<8x512xf32>
    %cst_22 = arith.constant dense<0.000000e+00> : vector<8x512xf32>
    %73 = tpu.matmul %68, %4, %cst_22 {dimension_numbers = #tpu.dot_dimension_numbers<[1], [0], [0], [1], [0, 0, 1, 1], [], []>} : vector<8x128xf32>, vector<128x512xf32>, vector<8x512xf32> -> vector<8x512xf32>
    %74 = arith.addf %72, %73 : vector<8x512xf32>
    %75 = vector.extract_strided_slice %74 {offsets = [0, 0], sizes = [8, 128], strides = [1, 1]} : vector<8x512xf32> to vector<8x128xf32>
    %76 = arith.negf %75 : vector<8x128xf32>
    %77 = math.exp %76 : vector<8x128xf32>
    %cst_23 = arith.constant 1.000000e+00 : f32
    %78 = vector.broadcast %cst_23 : f32 to vector<8x128xf32>
    %79 = arith.addf %78, %77 : vector<8x128xf32>
    %80 = arith.divf %78, %79 : vector<8x128xf32>
    %81 = vector.extract_strided_slice %74 {offsets = [0, 128], sizes = [8, 128], strides = [1, 1]} : vector<8x512xf32> to vector<8x128xf32>
    %82 = arith.negf %81 : vector<8x128xf32>
    %83 = math.exp %82 : vector<8x128xf32>
    %cst_24 = arith.constant 1.000000e+00 : f32
    %84 = vector.broadcast %cst_24 : f32 to vector<8x128xf32>
    %85 = arith.addf %84, %83 : vector<8x128xf32>
    %86 = arith.divf %84, %85 : vector<8x128xf32>
    %87 = vector.extract_strided_slice %74 {offsets = [0, 256], sizes = [8, 128], strides = [1, 1]} : vector<8x512xf32> to vector<8x128xf32>
    %88 = math.tanh %87 : vector<8x128xf32>
    %89 = vector.extract_strided_slice %74 {offsets = [0, 384], sizes = [8, 128], strides = [1, 1]} : vector<8x512xf32> to vector<8x128xf32>
    %90 = arith.negf %89 : vector<8x128xf32>
    %91 = math.exp %90 : vector<8x128xf32>
    %cst_25 = arith.constant 1.000000e+00 : f32
    %92 = vector.broadcast %cst_25 : f32 to vector<8x128xf32>
    %93 = arith.addf %92, %91 : vector<8x128xf32>
    %94 = arith.divf %92, %93 : vector<8x128xf32>
    %95 = arith.mulf %86, %66 : vector<8x128xf32>
    %96 = arith.mulf %80, %88 : vector<8x128xf32>
    %97 = arith.addf %95, %96 : vector<8x128xf32>
    %98 = math.tanh %97 : vector<8x128xf32>
    %99 = arith.mulf %94, %98 : vector<8x128xf32>
    %c3_i32 = arith.constant 3 : i32
    %c8_i32_26 = arith.constant 8 : i32
    %100 = arith.muli %c3_i32, %c8_i32_26 : i32
    %101 = tpu.assume_multiple %100, 8 : i32
    %102 = arith.index_cast %101 : i32 to index
    %c0_27 = arith.constant 0 : index
    %103 = vector.load %arg5[%102, %c0_27] : memref<64x512xf32, #tpu.memory_space<vmem>>, vector<8x512xf32>
    %cst_28 = arith.constant dense<0.000000e+00> : vector<8x512xf32>
    %104 = tpu.matmul %99, %4, %cst_28 {dimension_numbers = #tpu.dot_dimension_numbers<[1], [0], [0], [1], [0, 0, 1, 1], [], []>} : vector<8x128xf32>, vector<128x512xf32>, vector<8x512xf32> -> vector<8x512xf32>
    %105 = arith.addf %103, %104 : vector<8x512xf32>
    %106 = vector.extract_strided_slice %105 {offsets = [0, 0], sizes = [8, 128], strides = [1, 1]} : vector<8x512xf32> to vector<8x128xf32>
    %107 = arith.negf %106 : vector<8x128xf32>
    %108 = math.exp %107 : vector<8x128xf32>
    %cst_29 = arith.constant 1.000000e+00 : f32
    %109 = vector.broadcast %cst_29 : f32 to vector<8x128xf32>
    %110 = arith.addf %109, %108 : vector<8x128xf32>
    %111 = arith.divf %109, %110 : vector<8x128xf32>
    %112 = vector.extract_strided_slice %105 {offsets = [0, 128], sizes = [8, 128], strides = [1, 1]} : vector<8x512xf32> to vector<8x128xf32>
    %113 = arith.negf %112 : vector<8x128xf32>
    %114 = math.exp %113 : vector<8x128xf32>
    %cst_30 = arith.constant 1.000000e+00 : f32
    %115 = vector.broadcast %cst_30 : f32 to vector<8x128xf32>
    %116 = arith.addf %115, %114 : vector<8x128xf32>
    %117 = arith.divf %115, %116 : vector<8x128xf32>
    %118 = vector.extract_strided_slice %105 {offsets = [0, 256], sizes = [8, 128], strides = [1, 1]} : vector<8x512xf32> to vector<8x128xf32>
    %119 = math.tanh %118 : vector<8x128xf32>
    %120 = vector.extract_strided_slice %105 {offsets = [0, 384], sizes = [8, 128], strides = [1, 1]} : vector<8x512xf32> to vector<8x128xf32>
    %121 = arith.negf %120 : vector<8x128xf32>
    %122 = math.exp %121 : vector<8x128xf32>
    %cst_31 = arith.constant 1.000000e+00 : f32
    %123 = vector.broadcast %cst_31 : f32 to vector<8x128xf32>
    %124 = arith.addf %123, %122 : vector<8x128xf32>
    %125 = arith.divf %123, %124 : vector<8x128xf32>
    %126 = arith.mulf %117, %97 : vector<8x128xf32>
    %127 = arith.mulf %111, %119 : vector<8x128xf32>
    %128 = arith.addf %126, %127 : vector<8x128xf32>
    %129 = math.tanh %128 : vector<8x128xf32>
    %130 = arith.mulf %125, %129 : vector<8x128xf32>
    %c4_i32 = arith.constant 4 : i32
    %c8_i32_32 = arith.constant 8 : i32
    %131 = arith.muli %c4_i32, %c8_i32_32 : i32
    %132 = tpu.assume_multiple %131, 8 : i32
    %133 = arith.index_cast %132 : i32 to index
    %c0_33 = arith.constant 0 : index
    %134 = vector.load %arg5[%133, %c0_33] : memref<64x512xf32, #tpu.memory_space<vmem>>, vector<8x512xf32>
    %cst_34 = arith.constant dense<0.000000e+00> : vector<8x512xf32>
    %135 = tpu.matmul %130, %4, %cst_34 {dimension_numbers = #tpu.dot_dimension_numbers<[1], [0], [0], [1], [0, 0, 1, 1], [], []>} : vector<8x128xf32>, vector<128x512xf32>, vector<8x512xf32> -> vector<8x512xf32>
    %136 = arith.addf %134, %135 : vector<8x512xf32>
    %137 = vector.extract_strided_slice %136 {offsets = [0, 0], sizes = [8, 128], strides = [1, 1]} : vector<8x512xf32> to vector<8x128xf32>
    %138 = arith.negf %137 : vector<8x128xf32>
    %139 = math.exp %138 : vector<8x128xf32>
    %cst_35 = arith.constant 1.000000e+00 : f32
    %140 = vector.broadcast %cst_35 : f32 to vector<8x128xf32>
    %141 = arith.addf %140, %139 : vector<8x128xf32>
    %142 = arith.divf %140, %141 : vector<8x128xf32>
    %143 = vector.extract_strided_slice %136 {offsets = [0, 128], sizes = [8, 128], strides = [1, 1]} : vector<8x512xf32> to vector<8x128xf32>
    %144 = arith.negf %143 : vector<8x128xf32>
    %145 = math.exp %144 : vector<8x128xf32>
    %cst_36 = arith.constant 1.000000e+00 : f32
    %146 = vector.broadcast %cst_36 : f32 to vector<8x128xf32>
    %147 = arith.addf %146, %145 : vector<8x128xf32>
    %148 = arith.divf %146, %147 : vector<8x128xf32>
    %149 = vector.extract_strided_slice %136 {offsets = [0, 256], sizes = [8, 128], strides = [1, 1]} : vector<8x512xf32> to vector<8x128xf32>
    %150 = math.tanh %149 : vector<8x128xf32>
    %151 = vector.extract_strided_slice %136 {offsets = [0, 384], sizes = [8, 128], strides = [1, 1]} : vector<8x512xf32> to vector<8x128xf32>
    %152 = arith.negf %151 : vector<8x128xf32>
    %153 = math.exp %152 : vector<8x128xf32>
    %cst_37 = arith.constant 1.000000e+00 : f32
    %154 = vector.broadcast %cst_37 : f32 to vector<8x128xf32>
    %155 = arith.addf %154, %153 : vector<8x128xf32>
    %156 = arith.divf %154, %155 : vector<8x128xf32>
    %157 = arith.mulf %148, %128 : vector<8x128xf32>
    %158 = arith.mulf %142, %150 : vector<8x128xf32>
    %159 = arith.addf %157, %158 : vector<8x128xf32>
    %160 = math.tanh %159 : vector<8x128xf32>
    %161 = arith.mulf %156, %160 : vector<8x128xf32>
    %c5_i32 = arith.constant 5 : i32
    %c8_i32_38 = arith.constant 8 : i32
    %162 = arith.muli %c5_i32, %c8_i32_38 : i32
    %163 = tpu.assume_multiple %162, 8 : i32
    %164 = arith.index_cast %163 : i32 to index
    %c0_39 = arith.constant 0 : index
    %165 = vector.load %arg5[%164, %c0_39] : memref<64x512xf32, #tpu.memory_space<vmem>>, vector<8x512xf32>
    %cst_40 = arith.constant dense<0.000000e+00> : vector<8x512xf32>
    %166 = tpu.matmul %161, %4, %cst_40 {dimension_numbers = #tpu.dot_dimension_numbers<[1], [0], [0], [1], [0, 0, 1, 1], [], []>} : vector<8x128xf32>, vector<128x512xf32>, vector<8x512xf32> -> vector<8x512xf32>
    %167 = arith.addf %165, %166 : vector<8x512xf32>
    %168 = vector.extract_strided_slice %167 {offsets = [0, 0], sizes = [8, 128], strides = [1, 1]} : vector<8x512xf32> to vector<8x128xf32>
    %169 = arith.negf %168 : vector<8x128xf32>
    %170 = math.exp %169 : vector<8x128xf32>
    %cst_41 = arith.constant 1.000000e+00 : f32
    %171 = vector.broadcast %cst_41 : f32 to vector<8x128xf32>
    %172 = arith.addf %171, %170 : vector<8x128xf32>
    %173 = arith.divf %171, %172 : vector<8x128xf32>
    %174 = vector.extract_strided_slice %167 {offsets = [0, 128], sizes = [8, 128], strides = [1, 1]} : vector<8x512xf32> to vector<8x128xf32>
    %175 = arith.negf %174 : vector<8x128xf32>
    %176 = math.exp %175 : vector<8x128xf32>
    %cst_42 = arith.constant 1.000000e+00 : f32
    %177 = vector.broadcast %cst_42 : f32 to vector<8x128xf32>
    %178 = arith.addf %177, %176 : vector<8x128xf32>
    %179 = arith.divf %177, %178 : vector<8x128xf32>
    %180 = vector.extract_strided_slice %167 {offsets = [0, 256], sizes = [8, 128], strides = [1, 1]} : vector<8x512xf32> to vector<8x128xf32>
    %181 = math.tanh %180 : vector<8x128xf32>
    %182 = vector.extract_strided_slice %167 {offsets = [0, 384], sizes = [8, 128], strides = [1, 1]} : vector<8x512xf32> to vector<8x128xf32>
    %183 = arith.negf %182 : vector<8x128xf32>
    %184 = math.exp %183 : vector<8x128xf32>
    %cst_43 = arith.constant 1.000000e+00 : f32
    %185 = vector.broadcast %cst_43 : f32 to vector<8x128xf32>
    %186 = arith.addf %185, %184 : vector<8x128xf32>
    %187 = arith.divf %185, %186 : vector<8x128xf32>
    %188 = arith.mulf %179, %159 : vector<8x128xf32>
    %189 = arith.mulf %173, %181 : vector<8x128xf32>
    %190 = arith.addf %188, %189 : vector<8x128xf32>
    %191 = math.tanh %190 : vector<8x128xf32>
    %192 = arith.mulf %187, %191 : vector<8x128xf32>
    %c6_i32 = arith.constant 6 : i32
    %c8_i32_44 = arith.constant 8 : i32
    %193 = arith.muli %c6_i32, %c8_i32_44 : i32
    %194 = tpu.assume_multiple %193, 8 : i32
    %195 = arith.index_cast %194 : i32 to index
    %c0_45 = arith.constant 0 : index
    %196 = vector.load %arg5[%195, %c0_45] : memref<64x512xf32, #tpu.memory_space<vmem>>, vector<8x512xf32>
    %cst_46 = arith.constant dense<0.000000e+00> : vector<8x512xf32>
    %197 = tpu.matmul %192, %4, %cst_46 {dimension_numbers = #tpu.dot_dimension_numbers<[1], [0], [0], [1], [0, 0, 1, 1], [], []>} : vector<8x128xf32>, vector<128x512xf32>, vector<8x512xf32> -> vector<8x512xf32>
    %198 = arith.addf %196, %197 : vector<8x512xf32>
    %199 = vector.extract_strided_slice %198 {offsets = [0, 0], sizes = [8, 128], strides = [1, 1]} : vector<8x512xf32> to vector<8x128xf32>
    %200 = arith.negf %199 : vector<8x128xf32>
    %201 = math.exp %200 : vector<8x128xf32>
    %cst_47 = arith.constant 1.000000e+00 : f32
    %202 = vector.broadcast %cst_47 : f32 to vector<8x128xf32>
    %203 = arith.addf %202, %201 : vector<8x128xf32>
    %204 = arith.divf %202, %203 : vector<8x128xf32>
    %205 = vector.extract_strided_slice %198 {offsets = [0, 128], sizes = [8, 128], strides = [1, 1]} : vector<8x512xf32> to vector<8x128xf32>
    %206 = arith.negf %205 : vector<8x128xf32>
    %207 = math.exp %206 : vector<8x128xf32>
    %cst_48 = arith.constant 1.000000e+00 : f32
    %208 = vector.broadcast %cst_48 : f32 to vector<8x128xf32>
    %209 = arith.addf %208, %207 : vector<8x128xf32>
    %210 = arith.divf %208, %209 : vector<8x128xf32>
    %211 = vector.extract_strided_slice %198 {offsets = [0, 256], sizes = [8, 128], strides = [1, 1]} : vector<8x512xf32> to vector<8x128xf32>
    %212 = math.tanh %211 : vector<8x128xf32>
    %213 = vector.extract_strided_slice %198 {offsets = [0, 384], sizes = [8, 128], strides = [1, 1]} : vector<8x512xf32> to vector<8x128xf32>
    %214 = arith.negf %213 : vector<8x128xf32>
    %215 = math.exp %214 : vector<8x128xf32>
    %cst_49 = arith.constant 1.000000e+00 : f32
    %216 = vector.broadcast %cst_49 : f32 to vector<8x128xf32>
    %217 = arith.addf %216, %215 : vector<8x128xf32>
    %218 = arith.divf %216, %217 : vector<8x128xf32>
    %219 = arith.mulf %210, %190 : vector<8x128xf32>
    %220 = arith.mulf %204, %212 : vector<8x128xf32>
    %221 = arith.addf %219, %220 : vector<8x128xf32>
    %222 = math.tanh %221 : vector<8x128xf32>
    %223 = arith.mulf %218, %222 : vector<8x128xf32>
    %c7_i32 = arith.constant 7 : i32
    %c8_i32_50 = arith.constant 8 : i32
    %224 = arith.muli %c7_i32, %c8_i32_50 : i32
    %225 = tpu.assume_multiple %224, 8 : i32
    %226 = arith.index_cast %225 : i32 to index
    %c0_51 = arith.constant 0 : index
    %227 = vector.load %arg5[%226, %c0_51] : memref<64x512xf32, #tpu.memory_space<vmem>>, vector<8x512xf32>
    %cst_52 = arith.constant dense<0.000000e+00> : vector<8x512xf32>
    %228 = tpu.matmul %223, %4, %cst_52 {dimension_numbers = #tpu.dot_dimension_numbers<[1], [0], [0], [1], [0, 0, 1, 1], [], []>} : vector<8x128xf32>, vector<128x512xf32>, vector<8x512xf32> -> vector<8x512xf32>
    %229 = arith.addf %227, %228 : vector<8x512xf32>
    %230 = vector.extract_strided_slice %229 {offsets = [0, 0], sizes = [8, 128], strides = [1, 1]} : vector<8x512xf32> to vector<8x128xf32>
    %231 = arith.negf %230 : vector<8x128xf32>
    %232 = math.exp %231 : vector<8x128xf32>
    %cst_53 = arith.constant 1.000000e+00 : f32
    %233 = vector.broadcast %cst_53 : f32 to vector<8x128xf32>
    %234 = arith.addf %233, %232 : vector<8x128xf32>
    %235 = arith.divf %233, %234 : vector<8x128xf32>
    %236 = vector.extract_strided_slice %229 {offsets = [0, 128], sizes = [8, 128], strides = [1, 1]} : vector<8x512xf32> to vector<8x128xf32>
    %237 = arith.negf %236 : vector<8x128xf32>
    %238 = math.exp %237 : vector<8x128xf32>
    %cst_54 = arith.constant 1.000000e+00 : f32
    %239 = vector.broadcast %cst_54 : f32 to vector<8x128xf32>
    %240 = arith.addf %239, %238 : vector<8x128xf32>
    %241 = arith.divf %239, %240 : vector<8x128xf32>
    %242 = vector.extract_strided_slice %229 {offsets = [0, 256], sizes = [8, 128], strides = [1, 1]} : vector<8x512xf32> to vector<8x128xf32>
    %243 = math.tanh %242 : vector<8x128xf32>
    %244 = vector.extract_strided_slice %229 {offsets = [0, 384], sizes = [8, 128], strides = [1, 1]} : vector<8x512xf32> to vector<8x128xf32>
    %245 = arith.negf %244 : vector<8x128xf32>
    %246 = math.exp %245 : vector<8x128xf32>
    %cst_55 = arith.constant 1.000000e+00 : f32
    %247 = vector.broadcast %cst_55 : f32 to vector<8x128xf32>
    %248 = arith.addf %247, %246 : vector<8x128xf32>
    %249 = arith.divf %247, %248 : vector<8x128xf32>
    %250 = arith.mulf %241, %221 : vector<8x128xf32>
    %251 = arith.mulf %235, %243 : vector<8x128xf32>
    %252 = arith.addf %250, %251 : vector<8x128xf32>
    %253 = math.tanh %252 : vector<8x128xf32>
    %254 = arith.mulf %249, %253 : vector<8x128xf32>
    %c8_i32_56 = arith.constant 8 : i32
    %c0_57 = arith.constant 0 : index
    %c0_58 = arith.constant 0 : index
    %255 = vector.load %arg3[%c0_57, %c0_58] : memref<128x1xf32, #tpu.memory_space<vmem>>, vector<128x1xf32>
    %cst_59 = arith.constant dense<0.000000e+00> : vector<8x1xf32>
    %256 = tpu.matmul %254, %255, %cst_59 {dimension_numbers = #tpu.dot_dimension_numbers<[1], [0], [0], [1], [0, 0, 1, 1], [], []>} : vector<8x128xf32>, vector<128x1xf32>, vector<8x1xf32> -> vector<8x1xf32>
    %c0_60 = arith.constant 0 : index
    %c0_61 = arith.constant 0 : index
    %257 = vector.load %arg4[%c0_60, %c0_61] : memref<8x1xf32, #tpu.memory_space<vmem>>, vector<8x1xf32>
    tpu.vector_store %arg4[%c0_60, %c0_61], %256 {strides = array<i32>} : memref<8x1xf32, #tpu.memory_space<vmem>>, vector<8x1xf32>,
    return
  }
}

</mosaic_0001>

<bundles_post_ra>
// kernel: tpu_custom_call.1
= control target key start
LH: loop header
LB: loop body
LE: loop exit
PB: predicated region body
PF: predicated region fallthrough
CT: control target
= control target key end

     0   :  { %9 = vsyncpa [#allocation4], 0  ;;  %s1907_s18 = smov [#allocation3]   ;;  %s1908_s20 = smov 512   ;;  %s2959_s0 = inlined_call_operand.vmem [shape: f32[64,1], index: 0, kind: input, shape index: {}]   ;;  %s2960_s1 = inlined_call_operand.vmem [shape: f32[1,512], index: 1, kind: input, shape index: {}]   ;;  %s2961_s2 = inlined_call_operand.hbm [shape: f32[128,512], index: 2, kind: input, shape index: {}]   ;;  %s2962_s3 = inlined_call_operand.vmem [shape: f32[128,1], index: 3, kind: input, shape index: {}]   ;;  %s2963_s4 = inlined_call_operand.vmem [shape: f32[8,1], index: 4, kind: output, shape index: {}]  }
   0x1   :  { %s18_s17 = sshll.u32 %s2961_s2, 4  ;;  %s20_s19 = sshll.u32 %s1907_s18, 4  ;;  %s19_s17 = int_to_ptr.hbm [resolvable:$true] %s18_s17  ;;  %s21_s19 = int_to_ptr.vmem [resolvable:$true] %s20_s19 }
   0x2   :  { %s1909_s21 = smov 32  }
   0x3   :  { %26 = dma.hbm_to_vmem [thread:$0]  %s19_s17, 8192, %s21_s19, [#allocation4], %s1908_s20, %s1908_s20, %s1909_s21  }
   0x4   :  { %1905 = dma.done.wait [#allocation4], 8192  }
   0x5   :  { %1906 = vsyncadd [#allocation4], 4294959104  ;;  %v41_v0 = vld [vmem:[%s2960_s1] sm:$0xf]  ;;  %vm72_vm0 = vcmask 1040384   ;;  %vm47_vm1 = vcmask 7168  }
   0x6   :  { %v43_v1 = vperm.slane %v41_v0, 0  ;;  %v33_v2 = vld [vmem:[%s2959_s0] sm:$0xff]  ;;  %v1948_v3 = vld [vmem:[%s2959_s0 + $0x28] sm:$0xff]  ;;  %v1955_v4 = vld [vmem:[%s2959_s0 + $0x30] sm:$0xff]  ;;  %v44_v6 = vperm.slane %v41_v0, 1  ;;  %v46_v7 = vperm.slane %v41_v0, 3 }
   0x7   :  { %v1960_v5 = vld [vmem:[%s2959_s0 + $0x38] sm:$0xff]  ;;  %v45_v8 = vperm.slane %v41_v0, 2  ;;  %v1967_v9 = vld [vmem:[#allocation3 + $0x1e8] sm:$0xff]  ;;  %v1973_v10 = vld [vmem:[#allocation3 + $0x1e0] sm:$0xff] }
   0x8   :  { %1622 = vmatpush.msk.msra.mxu0 %vm72_vm0, %v43_v1  ;;  %1682 = vmatpush.msk.msra.mxu1 %vm72_vm0, %v43_v1  ;;  %v1975_v11 = vld [vmem:[#allocation3 + $0x1f8] sm:$0xff]  ;;  %v1979_v12 = vld [vmem:[#allocation3 + $0x1c8] sm:$0xff]  ;;  %v1981_v13 = vld [vmem:[#allocation3 + $0x1f0] sm:$0xff] }
   0x9   :  { %1683 = vmatpush.msk.msra.mxu2 %vm72_vm0, %v43_v1  ;;  %1684 = vmatpush.msk.msra.mxu3 %vm72_vm0, %v43_v1  ;;  %v1985_v14 = vld [vmem:[#allocation3 + $0x1c0] sm:$0xff]  ;;  %v1987_v15 = vld [vmem:[#allocation3 + $0x1d8] sm:$0xff]  ;;  %v1991_v16 = vld [vmem:[#allocation3 + $0x1a8] sm:$0xff] }
   0xa   :  { %1623 = vmatmul.msk.f32.vlgmr.msra.gmra.mxu0 %vm47_vm1, %v33_v2  ;;  %1628 = vmatmul.msk.f32.vlgmr.msra.gmra.mxu1 %vm47_vm1, %v1948_v3  ;;  %v1993_v17 = vld [vmem:[#allocation3 + $0x1d0] sm:$0xff]  ;;  %v34_v18 = vld [vmem:[%s2959_s0 + $0x8] sm:$0xff]  ;;  %v2002_v19 = vld [vmem:[#allocation3 + $0x1a0] sm:$0xff] }
   0xb   :  { %1629 = vmatmul.msk.f32.vlgmr.msra.gmra.mxu2 %vm47_vm1, %v1955_v4  ;;  %1630 = vmatmul.msk.f32.vlgmr.msra.gmra.mxu3 %vm47_vm1, %v1960_v5  ;;  %v2005_v20 = vld [vmem:[#allocation3 + $0x188] sm:$0xff]  ;;  %v2010_v21 = vld [vmem:[#allocation3 + $0x1b8] sm:$0xff]  ;;  %v2012_v22 = vld [vmem:[#allocation3 + $0x1b0] sm:$0xff] }
   0xc   :  { %1631 = vmatpush.msk.msrb.mxu1 %vm72_vm0, %v44_v6  ;;  %1649 = vmatpush.msk.msrb.mxu3 %vm72_vm0, %v46_v7  ;;  %v2016_v23 = vld [vmem:[#allocation3 + $0x180] sm:$0xff]  ;;  %v2018_v24 = vld [vmem:[#allocation3 + $0x168] sm:$0xff]  ;;  %v2022_v25 = vld [vmem:[#allocation3 + $0x198] sm:$0xff] }
   0xd   :  { %1640 = vmatpush.msk.msrb.mxu2 %vm72_vm0, %v45_v8  ;;  %348 = vmatpush.msrb.mxu0 %v1973_v10  ;;  %v2024_v26 = vld [vmem:[#allocation3 + $0x190] sm:$0xff]  ;;  %v2026_v27 = vld [vmem:[#allocation3 + $0x160] sm:$0xff]  ;;  %v2029_v28 = vld [vmem:[#allocation3 + $0x148] sm:$0xff] }
   0xe   :  { %368 = vmatpush.msra.mxu1 %v1967_v9  ;;  %408 = vmatpush.msra.mxu3 %v1975_v11  ;;  %v2034_v29 = vld [vmem:[#allocation3 + $0x178] sm:$0xff]  ;;  %v2036_v30 = vld [vmem:[#allocation3 + $0x170] sm:$0xff]  ;;  %v2045_v32 = vld [vmem:[#allocation3 + $0x140] sm:$0xff] }
   0xf   :  { %388 = vmatpush.msra.mxu2 %v1981_v13  ;;  %349 = vmatpush.msrb.mxu0 %v1985_v14  ;;  %v35_v31 = vld [vmem:[%s2959_s0 + $0x10] sm:$0xff]  ;;  %v2048_v33 = vld [vmem:[#allocation3 + $0x128] sm:$0xff]  ;;  %v2053_v34 = vld [vmem:[#allocation3 + $0x158] sm:$0xff] }
  0x10   :  { %369 = vmatpush.msra.mxu1 %v1979_v12  ;;  %409 = vmatpush.msra.mxu3 %v1987_v15  ;;  %v2055_v35 = vld [vmem:[#allocation3 + $0x150] sm:$0xff]  ;;  %v2059_v36 = vld [vmem:[#allocation3 + $0x120] sm:$0xff]  ;;  %v2061_v37 = vld [vmem:[#allocation3 + $0x108] sm:$0xff] }
  0x11   :  { %389 = vmatpush.msra.mxu2 %v1993_v17  ;;  %350 = vmatpush.msrb.mxu0 %v2002_v19  ;;  %v2065_v38 = vld [vmem:[#allocation3 + $0x138] sm:$0xff]  ;;  %v2067_v39 = vld [vmem:[#allocation3 + $0x130] sm:$0xff]  ;;  %v2069_v40 = vld [vmem:[#allocation3 + $0x100] sm:$0xff] }
  0x12   :  { %370 = vmatpush.msra.mxu1 %v1991_v16  ;;  %1624 = vmatmul.msk.f32.gmra.mxu0 %vm47_vm1, %v34_v18  ;;  %v2072_v41 = vld [vmem:[#allocation3 + $0xe8] sm:$0xff]  ;;  %v2077_v42 = vld [vmem:[#allocation3 + $0x118] sm:$0xff]  ;;  %v2079_v43 = vld [vmem:[#allocation3 + $0x110] sm:$0xff] }
  0x13   :  { %1632 = vmatmul.msk.f32.vlgmr.msrb.gmra.mxu1 %vm47_vm1, %v33_v2  ;;  %1641 = vmatmul.msk.f32.vlgmr.msrb.gmra.mxu2 %vm47_vm1, %v33_v2  ;;  %v36_v44 = vld [vmem:[%s2959_s0 + $0x18] sm:$0xff]  ;;  %v2088_v45 = vld [vmem:[#allocation3 + $0xe0] sm:$0xff]  ;;  %v2091_v46 = vld [vmem:[#allocation3 + $0xc8] sm:$0xff] }
  0x14   :  { %1650 = vmatmul.msk.f32.vlgmr.msrb.gmra.mxu3 %vm47_vm1, %v33_v2  ;;  %371 = vmatpush.msra.mxu1 %v2005_v20  ;;  %v2096_v47 = vld [vmem:[#allocation3 + $0xf8] sm:$0xff]  ;;  %v2098_v48 = vld [vmem:[#allocation3 + $0xf0] sm:$0xff]  ;;  %v2102_v49 = vld [vmem:[#allocation3 + $0xc0] sm:$0xff] }
  0x15   :  { %410 = vmatpush.msra.mxu3 %v2010_v21  ;;  %390 = vmatpush.msra.mxu2 %v2012_v22  ;;  %v2104_v50 = vld [vmem:[#allocation3 + $0xa8] sm:$0xff]  ;;  %v2108_v51 = vld [vmem:[#allocation3 + $0xd8] sm:$0xff]  ;;  %v2110_v52 = vld [vmem:[#allocation3 + $0xd0] sm:$0xff] }
  0x16   :  { %351 = vmatpush.msrb.mxu0 %v2016_v23  ;;  %372 = vmatpush.msra.mxu1 %v2018_v24  ;;  %3071 = vst [vmem:[#allocation6_spill] sm:$0xff] %v2104_v50  ;;  %v2112_v53 = vld [vmem:[#allocation3 + $0xa0] sm:$0xff]  ;;  %v2115_v54 = vld [vmem:[#allocation3 + $0x88] sm:$0xff]  ;;  %v2120_v55 = vld [vmem:[#allocation3 + $0xb8] sm:$0xff] }
  0x17   :  { %411 = vmatpush.msra.mxu3 %v2022_v25  ;;  %391 = vmatpush.msra.mxu2 %v2024_v26  ;;  %3072 = vst [vmem:[#allocation7_spill] sm:$0xff] %v2108_v51  ;;  %v2122_v56 = vld [vmem:[#allocation3 + $0xb0] sm:$0xff]  ;;  %v2124_v57 = vld [vmem:[#allocation3 + $0x80] sm:$0xff]  ;;  %v2139_v60 = vld [vmem:[#allocation3 + $0x68] sm:$0xff] }
  0x18   :  { %352 = vmatpush.msrb.mxu0 %v2026_v27  ;;  %373 = vmatpush.msra.mxu1 %v2029_v28  ;;  %3073 = vst [vmem:[#allocation8_spill] sm:$0xff] %v2112_v53  ;;  %v37_v58 = vld [vmem:[%s2959_s0 + $0x20] sm:$0xff]  ;;  %v2141_v61 = vld [vmem:[#allocation3 + $0x98] sm:$0xff]  ;;  %v2147_v63 = vld [vmem:[#allocation3 + $0x90] sm:$0xff] }
  0x19   :  { %412 = vmatpush.msra.mxu3 %v2034_v29  ;;  %392 = vmatpush.msra.mxu2 %v2036_v30  ;;  %3074 = vst [vmem:[#allocation9_spill] sm:$0xff] %v2115_v54  ;;  %v2133_v59 = vld [vmem:[#allocation3 + $0x60] sm:$0xff]  ;;  %v2151_v0 = vld [vmem:[#allocation3 + $0x48] sm:$0xff]  ;;  %v2153_v1 = vld [vmem:[#allocation3 + $0x78] sm:$0xff] }
  0x1a   :  { %1625 = vmatmul.msk.f32.gmra.mxu0 %vm47_vm1, %v35_v31  ;;  %374 = vmatpush.msra.mxu1 %v2048_v33  ;;  %3075 = vst [vmem:[#allocation10_spill] sm:$0xff] %v2120_v55  ;;  %v2145_v62 = vld [vmem:[#allocation3 + $0x40] sm:$0xff]  ;;  %v2159_v6 = vld [vmem:[#allocation3 + $0x70] sm:$0xff]  ;;  %v2163_v7 = vld [vmem:[#allocation3 + $0x28] sm:$0xff] }
  0x1b   :  { %1633 = vmatmul.msk.f32.gmra.mxu1 %vm47_vm1, %v34_v18  ;;  %1642 = vmatmul.msk.f32.gmra.mxu2 %vm47_vm1, %v34_v18  ;;  %3076 = vst [vmem:[#allocation11_spill] sm:$0xff] %v2122_v56  ;;  %v2155_v2 = vld [vmem:[#allocation3 + $0x20] sm:$0xff]  ;;  %v2165_v8 = vld [vmem:[#allocation3 + $0x58] sm:$0xff] }
  0x1c   :  { %1651 = vmatmul.msk.f32.gmra.mxu3 %vm47_vm1, %v34_v18  ;;  %353 = vmatpush.msrb.mxu0 %v2045_v32  ;;  %3077 = vst [vmem:[#allocation12_spill] sm:$0xff] %v2124_v57  ;;  %v2167_v18 = vld [vmem:[#allocation3] sm:$0xff] }
  0x1d   :  { %413 = vmatpush.msra.mxu3 %v2053_v34  ;;  %393 = vmatpush.msra.mxu2 %v2055_v35  ;;  %3078 = vst [vmem:[#allocation13_spill] sm:$0xff] %v2133_v59 }
  0x1e   :  { %354 = vmatpush.msrb.mxu0 %v2059_v36  ;;  %375 = vmatpush.msra.mxu1 %v2061_v37  ;;  %3079 = vst [vmem:[#allocation14_spill] sm:$0xff] %v2139_v60 }
  0x1f   :  { %414 = vmatpush.msra.mxu3 %v2065_v38  ;;  %394 = vmatpush.msra.mxu2 %v2067_v39  ;;  %3080 = vst [vmem:[#allocation15_spill] sm:$0xff] %v2141_v61 }
  0x20   :  { %355 = vmatpush.msrb.mxu0 %v2069_v40  ;;  %376 = vmatpush.msra.mxu1 %v2072_v41  ;;  %3081 = vst [vmem:[#allocation16_spill] sm:$0xff] %v2145_v62 }
  0x21   :  { %415 = vmatpush.msra.mxu3 %v2077_v42  ;;  %395 = vmatpush.msra.mxu2 %v2079_v43  ;;  %3082 = vst [vmem:[#allocation17_spill] sm:$0xff] %v2147_v63 }
  0x22   :  { %1626 = vmatmul.msk.f32.gmra.mxu0 %vm47_vm1, %v36_v44  ;;  %377 = vmatpush.msra.mxu1 %v2091_v46  ;;  %3083 = vst [vmem:[#allocation18_spill] sm:$0xff] %v2151_v0 }
  0x23   :  { %1634 = vmatmul.msk.f32.gmra.mxu1 %vm47_vm1, %v35_v31  ;;  %1643 = vmatmul.msk.f32.gmra.mxu2 %vm47_vm1, %v35_v31  ;;  %3084 = vst [vmem:[#allocation19_spill] sm:$0xff] %v2153_v1 }
  0x24   :  { %1652 = vmatmul.msk.f32.gmra.mxu3 %vm47_vm1, %v35_v31  ;;  %356 = vmatpush.msrb.mxu0 %v2088_v45  ;;  %3085 = vst [vmem:[#allocation20_spill] sm:$0xff] %v2155_v2  ;;  %v2175_v31 = vld [vmem:[#allocation3 + $0x50] sm:$0xff] }
  0x25   :  { %416 = vmatpush.msra.mxu3 %v2096_v47  ;;  %396 = vmatpush.msra.mxu2 %v2098_v48  ;;  %3086 = vst [vmem:[#allocation21_spill] sm:$0xff] %v2159_v6 }
  0x26   :  { %357 = vmatpush.msrb.mxu0 %v2102_v49  ;;  %378 = vmatpush.msra.mxu1 %v2104_v50  ;;  %3087 = vst [vmem:[#allocation22_spill] sm:$0xff] %v2163_v7 }
  0x27   :  { %417 = vmatpush.msra.mxu3 %v2108_v51  ;;  %397 = vmatpush.msra.mxu2 %v2110_v52  ;;  %3088 = vst [vmem:[#allocation23_spill] sm:$0xff] %v2165_v8 }
  0x28   :  { %358 = vmatpush.msrb.mxu0 %v2112_v53  ;;  %379 = vmatpush.msra.mxu1 %v2115_v54  ;;  %3089 = vst [vmem:[#allocation24_spill] sm:$0xff] %v2167_v18 }
  0x29   :  { %418 = vmatpush.msra.mxu3 %v2120_v55  ;;  %398 = vmatpush.msra.mxu2 %v2122_v56  ;;  %3090 = vst [vmem:[#allocation25_spill] sm:$0xff] %v2175_v31 }
  0x2a   :  { %359 = vmatpush.msrb.mxu0 %v2124_v57  ;;  %380 = vmatpush.msra.mxu1 %v2139_v60 }
  0x2b   :  { %1635 = vmatmul.msk.f32.gmra.mxu1 %vm47_vm1, %v36_v44  ;;  %1627 = vmatmul.msk.f32.gmra.mxu0 %vm47_vm1, %v37_v58 }
  0x2c   :  { %1644 = vmatmul.msk.f32.gmra.mxu2 %vm47_vm1, %v36_v44  ;;  %1653 = vmatmul.msk.f32.gmra.mxu3 %vm47_vm1, %v36_v44  ;;  %v2179_v44 = vld [vmem:[#allocation3 + $0x8] sm:$0xff] }
  0x2d   :  { %360 = vmatpush.msrb.mxu0 %v2133_v59  ;;  %419 = vmatpush.msra.mxu3 %v2141_v61  ;;  %3091 = vst [vmem:[#allocation26_spill] sm:$0xff] %v2179_v44 }
  0x2e   :  { %399 = vmatpush.msra.mxu2 %v2147_v63  ;;  %381 = vmatpush.msra.mxu1 %v2151_v0  ;;  %v1910_v0 = vmov 0.0  }
  0x2f   :  { %361 = vmatpush.msrb.mxu0 %v2145_v62  ;;  %420 = vmatpush.msra.mxu3 %v2153_v1  ;;  %v2181_v62 = vld [vmem:[#allocation3 + $0x38] sm:$0xff] }
  0x30   :  { %400 = vmatpush.msra.mxu2 %v2159_v6  ;;  %382 = vmatpush.msra.mxu1 %v2163_v7  ;;  %3092 = vst [vmem:[#allocation27_spill] sm:$0xff] %v2181_v62  ;;  %v2189_v7 = vld [vmem:[#allocation3 + $0x18] sm:$0xff] }
  0x31   :  { %362 = vmatpush.msrb.mxu0 %v2155_v2  ;;  %421 = vmatpush.msra.mxu3 %v2165_v8  ;;  %v2185_v2 = vld [vmem:[#allocation3 + $0x30] sm:$0xff]  ;;  %3094 = vst [vmem:[#allocation29_spill] sm:$0xff] %v2189_v7 }
  0x32   :  { %3093 = vst [vmem:[#allocation28_spill] sm:$0xff] %v2185_v2  ;;  %401 = vmatpush.msra.mxu2 %v2175_v31  ;;  %383 = vmatpush.msra.mxu1 %v2179_v44 }
  0x33   :  { %363 = vmatpush.msrb.mxu0 %v2167_v18  ;;  %1636 = vmatmul.msk.f32.gmra.mxu1 %vm47_vm1, %v37_v58  ;;  %v2193_v18 = vld [vmem:[#allocation3 + $0x10] sm:$0xff] }
  0x34   :  { %1645 = vmatmul.msk.f32.gmra.mxu2 %vm47_vm1, %v37_v58  ;;  %364 = vmatmul.f32.vlgmr.msrb.gmra.mxu0 %v1910_v0  ;;  %3095 = vst [vmem:[#allocation30_spill] sm:$0xff] %v2193_v18 }
  0x35   :  { %1654 = vmatmul.msk.f32.gmra.mxu3 %vm47_vm1, %v37_v58  ;;  %402 = vmatpush.msra.mxu2 %v2185_v2  ;;  %v3099_v58 = vld [vmem:[#allocation22_spill] sm:$0xff] }
  0x36   :  { %422 = vmatpush.msra.mxu3 %v2181_v62  ;;  %502 = vmatpush.msra.mxu0 %v1973_v10 }
  0x37   :  { %522 = vmatpush.msrb.mxu1 %v1967_v9  ;;  %403 = vmatpush.msra.mxu2 %v2193_v18 }
  0x38   :  { %423 = vmatpush.msra.mxu3 %v2189_v7  ;;  %503 = vmatpush.msra.mxu0 %v1985_v14 }
  0x39   :  { %542 = vmatpush.msrb.mxu2 %v1981_v13  ;;  %523 = vmatpush.msrb.mxu1 %v1979_v12 }
  0x3a   :  { %562 = vmatpush.msrb.mxu3 %v1975_v11  ;;  %504 = vmatpush.msra.mxu0 %v2002_v19 }
  0x3b   :  { %1637 = vmatmul.msk.f32.gmra.mxu1 %vm47_vm1, %v1948_v3  ;;  %543 = vmatpush.msrb.mxu2 %v1993_v17 }
  0x3c   :  { %563 = vmatpush.msrb.mxu3 %v1987_v15  ;;  %1646 = vmatmul.msk.f32.gmra.mxu2 %vm47_vm1, %v1948_v3 }
  0x3d   :  { %1655 = vmatmul.msk.f32.gmra.mxu3 %vm47_vm1, %v1948_v3  ;;  %524 = vmatpush.msrb.mxu1 %v1991_v16  ;;  %v3096_v3 = vld [vmem:[#allocation16_spill] sm:$0xff] }
  0x3e   :  { %544 = vmatpush.msrb.mxu2 %v2012_v22  ;;  %564 = vmatpush.msrb.mxu3 %v2010_v21 }
  0x3f   :  { %505 = vmatpush.msra.mxu0 %v2016_v23  ;;  %525 = vmatpush.msrb.mxu1 %v2005_v20 }
  0x40   :  { %545 = vmatpush.msrb.mxu2 %v2024_v26  ;;  %565 = vmatpush.msrb.mxu3 %v2022_v25 }
  0x41   :  { %506 = vmatpush.msra.mxu0 %v2026_v27  ;;  %526 = vmatpush.msrb.mxu1 %v2018_v24 }
  0x42   :  { %546 = vmatpush.msrb.mxu2 %v2036_v30  ;;  %566 = vmatpush.msrb.mxu3 %v2034_v29 }
  0x43   :  { %1638 = vmatmul.msk.f32.gmra.mxu1 %vm47_vm1, %v1955_v4  ;;  %507 = vmatpush.msra.mxu0 %v2045_v32 }
  0x44   :  { %1647 = vmatmul.msk.f32.gmra.mxu2 %vm47_vm1, %v1955_v4  ;;  %527 = vmatpush.msrb.mxu1 %v2029_v28 }
  0x45   :  { %1656 = vmatmul.msk.f32.gmra.mxu3 %vm47_vm1, %v1955_v4  ;;  %547 = vmatpush.msrb.mxu2 %v2055_v35  ;;  %v3097_v4 = vld [vmem:[#allocation18_spill] sm:$0xff] }
  0x46   :  { %567 = vmatpush.msrb.mxu3 %v2053_v34  ;;  %508 = vmatpush.msra.mxu0 %v2059_v36 }
  0x47   :  { %528 = vmatpush.msrb.mxu1 %v2048_v33  ;;  %548 = vmatpush.msrb.mxu2 %v2067_v39 }
  0x48   :  { %568 = vmatpush.msrb.mxu3 %v2065_v38  ;;  %509 = vmatpush.msra.mxu0 %v2069_v40 }
  0x49   :  { %529 = vmatpush.msrb.mxu1 %v2061_v37  ;;  %549 = vmatpush.msrb.mxu2 %v2079_v43 }
  0x4a   :  { %569 = vmatpush.msrb.mxu3 %v2077_v42  ;;  %510 = vmatpush.msra.mxu0 %v2088_v45 }
  0x4b   :  { %1639 = vmatmul.msk.f32.gmra.mxu1 %vm47_vm1, %v1960_v5  ;;  %550 = vmatpush.msrb.mxu2 %v2098_v48 }
  0x4c   :  { %1648 = vmatmul.msk.f32.gmra.mxu2 %vm47_vm1, %v1960_v5  ;;  %530 = vmatpush.msrb.mxu1 %v2072_v41 }
  0x4d   :  { %1657 = vmatmul.msk.f32.gmra.mxu3 %vm47_vm1, %v1960_v5  ;;  %511 = vmatpush.msra.mxu0 %v2102_v49  ;;  %v3098_v5 = vld [vmem:[#allocation20_spill] sm:$0xff] }
  0x4e   :  { %570 = vmatpush.msrb.mxu3 %v2096_v47  ;;  %531 = vmatpush.msrb.mxu1 %v2091_v46 }
  0x4f   :  { %551 = vmatpush.msrb.mxu2 %v2110_v52  ;;  %512 = vmatpush.msra.mxu0 %v2112_v53 }
  0x50   :  { %571 = vmatpush.msrb.mxu3 %v2108_v51  ;;  %532 = vmatpush.msrb.mxu1 %v2104_v50 }
  0x51   :  { %552 = vmatpush.msrb.mxu2 %v2122_v56  ;;  %513 = vmatpush.msra.mxu0 %v2124_v57 }
  0x52   :  { %572 = vmatpush.msrb.mxu3 %v2120_v55  ;;  %533 = vmatpush.msrb.mxu1 %v2115_v54 }
  0x53   :  { %384 = vmatmul.f32.vlgmr.msra.gmra.mxu1 %v1910_v0  ;;  %553 = vmatpush.msrb.mxu2 %v2147_v63 }
  0x54   :  { %404 = vmatmul.f32.vlgmr.msra.gmra.mxu2 %v1910_v0  ;;  %573 = vmatpush.msrb.mxu3 %v2141_v61 }
  0x55   :  { %424 = vmatmul.f32.vlgmr.msra.gmra.mxu3 %v1910_v0  ;;  %514 = vmatpush.msra.mxu0 %v2133_v59  ;;  %v3100_v0 = vld [vmem:[#allocation24_spill] sm:$0xff] }
  0x56   :  { %534 = vmatpush.msrb.mxu1 %v2139_v60  ;;  %554 = vmatpush.msrb.mxu2 %v2159_v6 }
  0x57   :  { %574 = vmatpush.msrb.mxu3 %v2153_v1  ;;  %515 = vmatpush.msra.mxu0 %v3096_v3 }
  0x58   :  { %535 = vmatpush.msrb.mxu1 %v3097_v4  ;;  %555 = vmatpush.msrb.mxu2 %v2175_v31 }
  0x59   :  { %575 = vmatpush.msrb.mxu3 %v2165_v8  ;;  %516 = vmatpush.msra.mxu0 %v3098_v5 }
  0x5a   :  { %536 = vmatpush.msrb.mxu1 %v3099_v58  ;;  %556 = vmatpush.msrb.mxu2 %v2185_v2 }
  0x5b   :  { %576 = vmatpush.msrb.mxu3 %v2181_v62  ;;  %517 = vmatpush.msra.mxu0 %v3100_v0 }
  0x5c   :  { %537 = vmatpush.msrb.mxu1 %v2179_v44  ;;  %557 = vmatpush.msrb.mxu2 %v2193_v18 }
  0x5d   :  { %577 = vmatpush.msrb.mxu3 %v2189_v7  ;;  %656 = vmatpush.msrb.mxu0 %v1973_v10 }
  0x5e   :  { %676 = vmatpush.msra.mxu1 %v1967_v9  ;;  %696 = vmatpush.msra.mxu2 %v1981_v13 }
  0x5f   :  { %716 = vmatpush.msra.mxu3 %v1975_v11  ;;  %657 = vmatpush.msrb.mxu0 %v1985_v14 }
  0x60   :  { %677 = vmatpush.msra.mxu1 %v1979_v12  ;;  %697 = vmatpush.msra.mxu2 %v1993_v17 }
  0x61   :  { %717 = vmatpush.msra.mxu3 %v1987_v15  ;;  %658 = vmatpush.msrb.mxu0 %v2002_v19 }
  0x62   :  { %678 = vmatpush.msra.mxu1 %v1991_v16  ;;  %698 = vmatpush.msra.mxu2 %v2012_v22 }
  0x63   :  { %718 = vmatpush.msra.mxu3 %v2010_v21  ;;  %659 = vmatpush.msrb.mxu0 %v2016_v23 }
  0x64   :  { %679 = vmatpush.msra.mxu1 %v2005_v20  ;;  %699 = vmatpush.msra.mxu2 %v2024_v26 }
  0x65   :  { %719 = vmatpush.msra.mxu3 %v2022_v25  ;;  %660 = vmatpush.msrb.mxu0 %v2026_v27 }
  0x66   :  { %680 = vmatpush.msra.mxu1 %v2018_v24  ;;  %700 = vmatpush.msra.mxu2 %v2036_v30 }
  0x67   :  { %720 = vmatpush.msra.mxu3 %v2034_v29  ;;  %661 = vmatpush.msrb.mxu0 %v2045_v32 }
  0x68   :  { %681 = vmatpush.msra.mxu1 %v2029_v28  ;;  %701 = vmatpush.msra.mxu2 %v2055_v35 }
  0x69   :  { %721 = vmatpush.msra.mxu3 %v2053_v34  ;;  %662 = vmatpush.msrb.mxu0 %v2059_v36 }
  0x6a   :  { %682 = vmatpush.msra.mxu1 %v2048_v33  ;;  %702 = vmatpush.msra.mxu2 %v2067_v39 }
  0x6b   :  { %722 = vmatpush.msra.mxu3 %v2065_v38  ;;  %663 = vmatpush.msrb.mxu0 %v2069_v40 }
  0x6c   :  { %683 = vmatpush.msra.mxu1 %v2061_v37  ;;  %703 = vmatpush.msra.mxu2 %v2079_v43 }
  0x6d   :  { %723 = vmatpush.msra.mxu3 %v2077_v42  ;;  %664 = vmatpush.msrb.mxu0 %v2088_v45 }
  0x6e   :  { %684 = vmatpush.msra.mxu1 %v2072_v41  ;;  %704 = vmatpush.msra.mxu2 %v2098_v48 }
  0x6f   :  { %724 = vmatpush.msra.mxu3 %v2096_v47  ;;  %665 = vmatpush.msrb.mxu0 %v2102_v49 }
  0x70   :  { %685 = vmatpush.msra.mxu1 %v2091_v46  ;;  %705 = vmatpush.msra.mxu2 %v2110_v52 }
  0x71   :  { %725 = vmatpush.msra.mxu3 %v2108_v51  ;;  %666 = vmatpush.msrb.mxu0 %v2112_v53 }
  0x72   :  { %686 = vmatpush.msra.mxu1 %v2104_v50  ;;  %706 = vmatpush.msra.mxu2 %v2122_v56 }
  0x73   :  { %726 = vmatpush.msra.mxu3 %v2120_v55  ;;  %667 = vmatpush.msrb.mxu0 %v2124_v57 }
  0x74   :  { %687 = vmatpush.msra.mxu1 %v2115_v54  ;;  %707 = vmatpush.msra.mxu2 %v2147_v63 }
  0x75   :  { %727 = vmatpush.msra.mxu3 %v2141_v61  ;;  %668 = vmatpush.msrb.mxu0 %v2133_v59 }
  0x76   :  { %688 = vmatpush.msra.mxu1 %v2139_v60  ;;  %708 = vmatpush.msra.mxu2 %v2159_v6 }
  0x77   :  { %728 = vmatpush.msra.mxu3 %v2153_v1  ;;  %669 = vmatpush.msrb.mxu0 %v3096_v3 }
  0x78   :  { %689 = vmatpush.msra.mxu1 %v3097_v4  ;;  %709 = vmatpush.msra.mxu2 %v2175_v31 }
  0x79   :  { %729 = vmatpush.msra.mxu3 %v2165_v8  ;;  %670 = vmatpush.msrb.mxu0 %v3098_v5 }
  0x7a   :  { %690 = vmatpush.msra.mxu1 %v3099_v58  ;;  %710 = vmatpush.msra.mxu2 %v2185_v2 }
  0x7b   :  { %730 = vmatpush.msra.mxu3 %v2181_v62  ;;  %671 = vmatpush.msrb.mxu0 %v3100_v0 }
  0x7c   :  { %691 = vmatpush.msra.mxu1 %v2179_v44  ;;  %711 = vmatpush.msra.mxu2 %v2193_v18 }
  0x7d   :  { %731 = vmatpush.msra.mxu3 %v2189_v7 }
  0x87   :  { %v98_v4 = vpop.f32.mrf.mxu0  ;;  %v2347_v31 = vpop.f32.mrf.mxu1 }
  0x88   :  { %3101 = vst [vmem:[#allocation31_spill] sm:$0xff] %v2347_v31 }
  0x8e   :  { %v2349_v8 = vpop.f32.mrf.mxu2  ;;  %v2351_v5 = vpop.f32.mrf.mxu3 }
  0x8f   :  { %3102 = vst [vmem:[#allocation32_spill] sm:$0xff] %v2349_v8  ;;  %v2353_v3 = vpop.f32.mrf.mxu0 }
  0x90   :  { %3103 = vst [vmem:[#allocation33_spill] sm:$0xff] %v2351_v5  ;;  %v139_v58 = vpop.f32.mrf.mxu1 }
  0x91   :  { %3104 = vst [vmem:[#allocation34_spill] sm:$0xff] %v2353_v3 }
  0x96   :  { %v180_v2 = vpop.f32.mrf.mxu2 }
  0x97   :  { %v221_v62 = vpop.f32.mrf.mxu3  ;;  %v2357_v0 = vpop.f32.mrf.mxu0 }
  0x98   :  { %v2355_v1 = vpop.f32.mrf.mxu1  ;;  %3106 = vst [vmem:[#allocation36_spill] sm:$0xff] %v2357_v0 }
  0x99   :  { %3105 = vst [vmem:[#allocation35_spill] sm:$0xff] %v2355_v1 }
  0x9e   :  { %v2359_v44 = vpop.f32.mrf.mxu2 }
  0x9f   :  { %3107 = vst [vmem:[#allocation37_spill] sm:$0xff] %v2359_v44  ;;  %v2361_v18 = vpop.f32.mrf.mxu3  ;;  %v2365_v31 = vpop.f32.mrf.mxu0 }
  0xa0   :  { %3108 = vst [vmem:[#allocation38_spill] sm:$0xff] %v2361_v18  ;;  %v2363_v7 = vpop.f32.mrf.mxu1 }
  0xa1   :  { %3109 = vst [vmem:[#allocation39_spill] sm:$0xff] %v2363_v7 }
  0xa2   :  { %3110 = vst [vmem:[#allocation40_spill] sm:$0xff] %v2365_v31 }
  0xa6   :  { %v2367_v8 = vpop.f32.mrf.mxu2 }
  0xa7   :  { %3111 = vst [vmem:[#allocation41_spill] sm:$0xff] %v2367_v8  ;;  %v2369_v5 = vpop.f32.mrf.mxu3 }
  0xa8   :  { %3112 = vst [vmem:[#allocation42_spill] sm:$0xff] %v2369_v5  ;;  %v2371_v6 = vpop.f32.mrf.mxu1  ;;  %v2373_v3 = vpop.f32.mrf.mxu0 }
  0xa9   :  { %3113 = vst [vmem:[#allocation43_spill] sm:$0xff] %v2371_v6 }
  0xaa   :  { %3114 = vst [vmem:[#allocation44_spill] sm:$0xff] %v2373_v3 }
  0xaf   :  { %v2375_v60 = vpop.f32.mrf.mxu2  ;;  %v2377_v1 = vpop.f32.mrf.mxu3 }
  0xb0   :  { %3115 = vst [vmem:[#allocation45_spill] sm:$0xff] %v2375_v60  ;;  %v2379_v0 = vpop.f32.mrf.mxu1 }
  0xb1   :  { %3116 = vst [vmem:[#allocation46_spill] sm:$0xff] %v2377_v1  ;;  %v365_v31 = vpop.f32.mrf.mxu0 }
  0xb2   :  { %3117 = vst [vmem:[#allocation47_spill] sm:$0xff] %v2379_v0  ;;  %v428_v8 = vadd.f32 %v365_v31, %v98_v4 }
  0xb4   :  { %v1658_v3 = vmul.f32 -1.442695, %v428_v8 }
  0xb6   :  { %1689 = vpow2.f32 %v1658_v3 }
  0xb7   :  { %v2381_v44 = vpop.f32.mrf.mxu2 }
  0xb8   :  { %3118 = vst [vmem:[#allocation48_spill] sm:$0xff] %v2381_v44  ;;  %v2383_v18 = vpop.f32.mrf.mxu3  ;;  %v2385_v7 = vpop.f32.mrf.mxu1 }
  0xb9   :  { %3119 = vst [vmem:[#allocation49_spill] sm:$0xff] %v2383_v18 }
  0xba   :  { %3120 = vst [vmem:[#allocation50_spill] sm:$0xff] %v2385_v7 }
  0xbc   :  { %v1690_v44 = vpop.eup %1689 }
  0xbd   :  { %v435_v18 = vadd.f32 1.0, %v1690_v44 }
  0xbf   :  { %v2387_v59 = vpop.f32.mrf.mxu2  ;;  %1691 = vrcp.f32 %v435_v18  ;;  %vm441_vm3 = vweird.f32 %v435_v18 }
  0xc0   :  { %3121 = vst [vmem:[#allocation51_spill] sm:$0xff] %v2387_v59  ;;  %v2389_v5 = vpop.f32.mrf.mxu3  ;;  %v2391_v6 = vpop.f32.mrf.mxu1 }
  0xc1   :  { %3122 = vst [vmem:[#allocation52_spill] sm:$0xff] %v2389_v5 }
  0xc2   :  { %3123 = vst [vmem:[#allocation53_spill] sm:$0xff] %v2391_v6 }
  0xc5   :  { %v1692_v6 = vpop.eup %1691 }
  0xc6   :  { %vm442_vm2 = vweird.f32 %v1692_v6 }
  0xc7   :  { %v2397_v0 = vpop.f32.mrf.mxu2  ;;  %vm443_vm5 = vmor %vm441_vm3, %vm442_vm2 }
  0xc8   :  { %v2393_v60 = vpop.f32.mrf.mxu3  ;;  %v2395_v1 = vpop.f32.mrf.mxu1  ;;  %3126 = vst [vmem:[#allocation56_spill] sm:$0xff] %v2397_v0 }
  0xc9   :  { %3124 = vst [vmem:[#allocation54_spill] sm:$0xff] %v2393_v60  ;;  %v437_v60 = vmul.f32 %v1692_v6, %v435_v18 }
  0xca   :  { %3125 = vst [vmem:[#allocation55_spill] sm:$0xff] %v2395_v1 }
  0xcb   :  { %v438_v44 = vsub.f32 1.0, %v437_v60 }
  0xcd   :  { %v439_v57 = vmul.f32 %v1692_v6, %v438_v44 }
  0xcf   :  { %v2401_v59 = vpop.f32.mrf.mxu2 }
  0xd0   :  { %v2399_v61 = vpop.f32.mrf.mxu3  ;;  %v385_v7 = vpop.f32.mrf.mxu1  ;;  %3128 = vst [vmem:[#allocation58_spill] sm:$0xff] %v2401_v59  ;;  %v440_v59 = vadd.f32 %v1692_v6, %v439_v57 }
  0xd1   :  { %3127 = vst [vmem:[#allocation57_spill] sm:$0xff] %v2399_v61  ;;  %v429_v31 = vadd.f32 %v385_v7, %v139_v58 }
  0xd3   :  { %v1659_v4 = vmul.f32 -1.442695, %v429_v31 }
  0xd5   :  { %1693 = vpow2.f32 %v1659_v4 }
  0xd7   :  { %v405_v0 = vpop.f32.mrf.mxu2 }
  0xd8   :  { %v425_v8 = vpop.f32.mrf.mxu3  ;;  %v430_v54 = vadd.f32 %v405_v0, %v180_v2  ;;  %v444_v2 = vsel %vm443_vm5, %v1692_v6, %v440_v59 }
  0xd9   :  { %v431_v3 = vadd.f32 %v425_v8, %v221_v62  ;;  %v447_v8 = vand.u32 2147483648, %v435_v18 }
  0xdb   :  { %v1694_v5 = vpop.eup %1693  ;;  %v1660_v63 = vmul.f32 -1.442695, %v431_v3  ;;  %v448_v55 = vor.u32 1.1754944e-38, %v447_v8 }
  0xdc   :  { %v454_v1 = vadd.f32 1.0, %v1694_v5  ;;  %v445_v5 = vand.u32 2147483647, %v435_v18 }
  0xdd   :  { %1695 = vpow2.f32 %v1660_v63 }
  0xde   :  { %1697 = vrcp.f32 %v454_v1  ;;  %v466_v62 = vand.u32 2147483648, %v454_v1  ;;  %v464_v63 = vand.u32 2147483647, %v454_v1  ;;  %vm460_vm6 = vweird.f32 %v454_v1 }
  0xdf   :  { %1699 = vtanh.f32 %v430_v54  ;;  %vm446_vm8 = vcmp.eq.f32.partialorder %v445_v5, 8.507059e+37 }
  0xe0   :  { %vm465_vm9 = vcmp.eq.f32.partialorder %v464_v63, 8.507059e+37 }
  0xe3   :  { %v1696_v61 = vpop.eup %1695 }
  0xe4   :  { %v1698_v7 = vpop.eup %1697  ;;  %v474_v58 = vadd.f32 1.0, %v1696_v61  ;;  %v467_v61 = vor.u32 1.1754944e-38, %v466_v62 }
  0xe5   :  { %v456_v31 = vmul.f32 %v1698_v7, %v454_v1  ;;  %vm461_vm4 = vweird.f32 %v1698_v7  ;;  %v1700_v60 = vpop.eup %1699 }
  0xe6   :  { %1701 = vrcp.f32 %v474_v58  ;;  %vm462_vm7 = vmor %vm460_vm6, %vm461_vm4  ;;  %v486_v1 = vand.u32 2147483648, %v474_v58  ;;  %vm480_vm11 = vweird.f32 %v474_v58  ;;  %v484_v6 = vand.u32 2147483647, %v474_v58 }
  0xe7   :  { %v457_v4 = vsub.f32 1.0, %v456_v31  ;;  %v449_v31 = vsel %vm446_vm8, %v448_v55, %v444_v2  ;;  %v3156_v2 = vld [vmem:[#allocation38_spill] sm:$0xff] }
  0xe8   :  { %vm485_vm13 = vcmp.eq.f32.partialorder %v484_v6, 8.507059e+37  ;;  %v3157_v6 = vld [vmem:[#allocation37_spill] sm:$0xff] }
  0xe9   :  { %v458_v3 = vmul.f32 %v1698_v7, %v457_v4  ;;  %v491_v4 = vmul.f32 %v1700_v60, %v449_v31 }
  0xeb   :  { %v459_v0 = vadd.f32 %v1698_v7, %v458_v3 }
  0xec   :  { %v1702_v44 = vpop.eup %1701 }
  0xed   :  { %v463_v54 = vsel %vm462_vm7, %v1698_v7, %v459_v0  ;;  %v476_v57 = vmul.f32 %v1702_v44, %v474_v58  ;;  %vm481_vm10 = vweird.f32 %v1702_v44  ;;  %v487_v7 = vor.u32 1.1754944e-38, %v486_v1 }
  0xee   :  { %v468_v56 = vsel %vm465_vm9, %v467_v61, %v463_v54  ;;  %vm482_vm12 = vmor %vm480_vm11, %vm481_vm10 }
  0xef   :  { %v490_v50 = vmul.f32 0.0, %v468_v56  ;;  %v477_v18 = vsub.f32 1.0, %v476_v57  ;;  %v3155_v56 = vld [vmem:[#allocation35_spill] sm:$0xff] }
  0xf1   :  { %v2403_v53 = vadd.f32 %v491_v4, %v490_v50  ;;  %v478_v51 = vmul.f32 %v1702_v44, %v477_v18  ;;  %v3154_v50 = vld [vmem:[#allocation34_spill] sm:$0xff] }
  0xf3   :  { %1703 = vtanh.f32 %v2403_v53  ;;  %v479_v59 = vadd.f32 %v1702_v44, %v478_v51 }
  0xf5   :  { %v483_v62 = vsel %vm482_vm12, %v1702_v44, %v479_v59 }
  0xf6   :  { %v488_v55 = vsel %vm485_vm13, %v487_v7, %v483_v62 }
  0xf9   :  { %v1704_v8 = vpop.eup %1703 }
  0xfa   :  { %v494_v3 = vmul.f32 %v1704_v8, %v488_v55 }
  0xfc   :  { %518 = vmatmul.f32.vlgmr.msra.gmra.mxu0 %v494_v3  ;;  %538 = vmatmul.f32.vlgmr.msrb.gmra.mxu1 %v494_v3 }
  0xfd   :  { %558 = vmatmul.f32.vlgmr.msrb.gmra.mxu2 %v494_v3  ;;  %578 = vmatmul.f32.vlgmr.msrb.gmra.mxu3 %v494_v3 }
  0xfe   :  { %810 = vmatpush.msra.mxu0 %v1973_v10  ;;  %830 = vmatpush.msrb.mxu1 %v1967_v9  ;;  %v3129_v9 = vld [vmem:[#allocation7_spill] sm:$0xff]  ;;  %v3130_v10 = vld [vmem:[#allocation8_spill] sm:$0xff] }
  0xff   :  { %850 = vmatpush.msrb.mxu2 %v1981_v13  ;;  %870 = vmatpush.msrb.mxu3 %v1975_v11  ;;  %v3131_v11 = vld [vmem:[#allocation6_spill] sm:$0xff] }
 0x100   :  { %811 = vmatpush.msra.mxu0 %v1985_v14  ;;  %831 = vmatpush.msrb.mxu1 %v1979_v12  ;;  %v3132_v12 = vld [vmem:[#allocation11_spill] sm:$0xff]  ;;  %v3133_v13 = vld [vmem:[#allocation10_spill] sm:$0xff]  ;;  %v3134_v14 = vld [vmem:[#allocation12_spill] sm:$0xff] }
 0x101   :  { %851 = vmatpush.msrb.mxu2 %v1993_v17  ;;  %871 = vmatpush.msrb.mxu3 %v1987_v15  ;;  %v3135_v15 = vld [vmem:[#allocation9_spill] sm:$0xff]  ;;  %v3137_v17 = vld [vmem:[#allocation15_spill] sm:$0xff] }
 0x102   :  { %812 = vmatpush.msra.mxu0 %v2002_v19  ;;  %832 = vmatpush.msrb.mxu1 %v1991_v16  ;;  %v3136_v16 = vld [vmem:[#allocation17_spill] sm:$0xff] }
 0x103   :  { %852 = vmatpush.msrb.mxu2 %v2012_v22  ;;  %872 = vmatpush.msrb.mxu3 %v2010_v21  ;;  %v3138_v19 = vld [vmem:[#allocation13_spill] sm:$0xff]  ;;  %v3141_v22 = vld [vmem:[#allocation19_spill] sm:$0xff] }
 0x104   :  { %813 = vmatpush.msra.mxu0 %v2016_v23  ;;  %833 = vmatpush.msrb.mxu1 %v2005_v20  ;;  %v3139_v20 = vld [vmem:[#allocation14_spill] sm:$0xff]  ;;  %v3140_v21 = vld [vmem:[#allocation21_spill] sm:$0xff]  ;;  %v3142_v23 = vld [vmem:[#allocation16_spill] sm:$0xff] }
 0x105   :  { %853 = vmatpush.msrb.mxu2 %v2024_v26  ;;  %873 = vmatpush.msrb.mxu3 %v2022_v25  ;;  %v3144_v25 = vld [vmem:[#allocation25_spill] sm:$0xff]  ;;  %v3145_v26 = vld [vmem:[#allocation23_spill] sm:$0xff] }
 0x106   :  { %814 = vmatpush.msra.mxu0 %v2026_v27  ;;  %834 = vmatpush.msrb.mxu1 %v2018_v24  ;;  %v3143_v24 = vld [vmem:[#allocation18_spill] sm:$0xff]  ;;  %v3146_v27 = vld [vmem:[#allocation20_spill] sm:$0xff] }
 0x107   :  { %854 = vmatpush.msrb.mxu2 %v2036_v30  ;;  %874 = vmatpush.msrb.mxu3 %v2034_v29  ;;  %v3148_v29 = vld [vmem:[#allocation28_spill] sm:$0xff]  ;;  %v3149_v30 = vld [vmem:[#allocation27_spill] sm:$0xff] }
 0x108   :  { %815 = vmatpush.msra.mxu0 %v2045_v32  ;;  %835 = vmatpush.msrb.mxu1 %v2029_v28  ;;  %v3147_v28 = vld [vmem:[#allocation22_spill] sm:$0xff]  ;;  %v3150_v32 = vld [vmem:[#allocation24_spill] sm:$0xff] }
 0x109   :  { %855 = vmatpush.msrb.mxu2 %v2055_v35  ;;  %875 = vmatpush.msrb.mxu3 %v2053_v34  ;;  %v3152_v34 = vld [vmem:[#allocation30_spill] sm:$0xff]  ;;  %v3153_v35 = vld [vmem:[#allocation29_spill] sm:$0xff] }
 0x10a   :  { %816 = vmatpush.msra.mxu0 %v2059_v36  ;;  %836 = vmatpush.msrb.mxu1 %v2048_v33  ;;  %v3151_v33 = vld [vmem:[#allocation26_spill] sm:$0xff] }
 0x10b   :  { %856 = vmatpush.msrb.mxu2 %v2067_v39  ;;  %876 = vmatpush.msrb.mxu3 %v2065_v38 }
 0x10c   :  { %817 = vmatpush.msra.mxu0 %v2069_v40  ;;  %837 = vmatpush.msrb.mxu1 %v2061_v37 }
 0x10d   :  { %857 = vmatpush.msrb.mxu2 %v2079_v43  ;;  %877 = vmatpush.msrb.mxu3 %v2077_v42 }
 0x10e   :  { %818 = vmatpush.msra.mxu0 %v2088_v45  ;;  %838 = vmatpush.msrb.mxu1 %v2072_v41 }
 0x10f   :  { %858 = vmatpush.msrb.mxu2 %v2098_v48  ;;  %878 = vmatpush.msrb.mxu3 %v2096_v47 }
 0x110   :  { %819 = vmatpush.msra.mxu0 %v2102_v49  ;;  %839 = vmatpush.msrb.mxu1 %v2091_v46 }
 0x111   :  { %859 = vmatpush.msrb.mxu2 %v2110_v52  ;;  %879 = vmatpush.msrb.mxu3 %v3129_v9 }
 0x112   :  { %820 = vmatpush.msra.mxu0 %v3130_v10  ;;  %840 = vmatpush.msrb.mxu1 %v3131_v11 }
 0x113   :  { %860 = vmatpush.msrb.mxu2 %v3132_v12  ;;  %880 = vmatpush.msrb.mxu3 %v3133_v13 }
 0x114   :  { %821 = vmatpush.msra.mxu0 %v3134_v14  ;;  %841 = vmatpush.msrb.mxu1 %v3135_v15 }
 0x115   :  { %861 = vmatpush.msrb.mxu2 %v3136_v16  ;;  %881 = vmatpush.msrb.mxu3 %v3137_v17 }
 0x116   :  { %822 = vmatpush.msra.mxu0 %v3138_v19  ;;  %842 = vmatpush.msrb.mxu1 %v3139_v20 }
 0x117   :  { %862 = vmatpush.msrb.mxu2 %v3140_v21  ;;  %882 = vmatpush.msrb.mxu3 %v3141_v22 }
 0x118   :  { %823 = vmatpush.msra.mxu0 %v3142_v23  ;;  %843 = vmatpush.msrb.mxu1 %v3143_v24 }
 0x119   :  { %863 = vmatpush.msrb.mxu2 %v3144_v25  ;;  %883 = vmatpush.msrb.mxu3 %v3145_v26 }
 0x11a   :  { %824 = vmatpush.msra.mxu0 %v3146_v27  ;;  %844 = vmatpush.msrb.mxu1 %v3147_v28 }
 0x11b   :  { %864 = vmatpush.msrb.mxu2 %v3148_v29  ;;  %884 = vmatpush.msrb.mxu3 %v3149_v30 }
 0x11c   :  { %825 = vmatpush.msra.mxu0 %v3150_v32  ;;  %845 = vmatpush.msrb.mxu1 %v3151_v33 }
 0x11d   :  { %865 = vmatpush.msrb.mxu2 %v3152_v34  ;;  %885 = vmatpush.msrb.mxu3 %v3153_v35 }
 0x179   :  { %v519_v37 = vpop.f32.mrf.mxu0  ;;  %v539_v41 = vpop.f32.mrf.mxu1 }
 0x17a   :  { %v582_v51 = vadd.f32 %v519_v37, %v3154_v50  ;;  %v583_v58 = vadd.f32 %v539_v41, %v3155_v56 }
 0x17c   :  { %v1661_v5 = vmul.f32 -1.442695, %v582_v51  ;;  %v1662_v63 = vmul.f32 -1.442695, %v583_v58 }
 0x17e   :  { %1705 = vpow2.f32 %v1661_v5 }
 0x17f   :  { %1707 = vpow2.f32 %v1662_v63 }
 0x180   :  { %v579_v60 = vpop.f32.mrf.mxu3  ;;  %v559_v4 = vpop.f32.mrf.mxu2 }
 0x181   :  { %v585_v0 = vadd.f32 %v579_v60, %v3156_v2  ;;  %v584_v62 = vadd.f32 %v559_v4, %v3157_v6 }
 0x183   :  { %v1663_v44 = vmul.f32 -1.442695, %v585_v0 }
 0x184   :  { %v1706_v61 = vpop.eup %1705 }
 0x185   :  { %v1708_v54 = vpop.eup %1707  ;;  %v589_v57 = vadd.f32 1.0, %v1706_v61  ;;  %1709 = vpow2.f32 %v1663_v44 }
 0x186   :  { %v608_v31 = vadd.f32 1.0, %v1708_v54 }
 0x187   :  { %1711 = vrcp.f32 %v589_v57  ;;  %v601_v41 = vand.u32 2147483648, %v589_v57  ;;  %v599_v56 = vand.u32 2147483647, %v589_v57  ;;  %vm595_vm0 = vweird.f32 %v589_v57 }
 0x188   :  { %1713 = vrcp.f32 %v608_v31  ;;  %v620_v50 = vand.u32 2147483648, %v608_v31  ;;  %v618_v5 = vand.u32 2147483647, %v608_v31  ;;  %vm614_vm2 = vweird.f32 %v608_v31 }
 0x189   :  { %v602_v2 = vor.u32 1.1754944e-38, %v601_v41  ;;  %vm600_vm5 = vcmp.eq.f32.partialorder %v599_v56, 8.507059e+37 }
 0x18a   :  { %v621_v61 = vor.u32 1.1754944e-38, %v620_v50  ;;  %vm619_vm6 = vcmp.eq.f32.partialorder %v618_v5, 8.507059e+37  ;;  %v2481_v5 = vld [vmem:[#allocation3 + $0x1e8] sm:$0xff] }
 0x18b   :  { %v1710_v18 = vpop.eup %1709 }
 0x18c   :  { %v628_v59 = vadd.f32 1.0, %v1710_v18 }
 0x18d   :  { %v1712_v1 = vpop.eup %1711 }
 0x18e   :  { %v1714_v7 = vpop.eup %1713  ;;  %v591_v8 = vmul.f32 %v1712_v1, %v589_v57  ;;  %1715 = vrcp.f32 %v628_v59  ;;  %vm596_vm14 = vweird.f32 %v1712_v1  ;;  %v640_v41 = vand.u32 2147483648, %v628_v59 }
 0x18f   :  { %v610_v55 = vmul.f32 %v1714_v7, %v608_v31  ;;  %1717 = vtanh.f32 %v584_v62  ;;  %vm615_vm15 = vweird.f32 %v1714_v7  ;;  %vm597_vm3 = vmor %vm595_vm0, %vm596_vm14  ;;  %vm634_vm8 = vweird.f32 %v628_v59 }
 0x190   :  { %v592_v3 = vsub.f32 1.0, %v591_v8  ;;  %vm616_vm4 = vmor %vm614_vm2, %vm615_vm15 }
 0x191   :  { %v611_v37 = vsub.f32 1.0, %v610_v55 }
 0x192   :  { %v593_v51 = vmul.f32 %v1712_v1, %v592_v3 }
 0x193   :  { %v612_v58 = vmul.f32 %v1714_v7, %v611_v37 }
 0x194   :  { %v1716_v63 = vpop.eup %1715  ;;  %v594_v60 = vadd.f32 %v1712_v1, %v593_v51  ;;  %v641_v51 = vor.u32 1.1754944e-38, %v640_v41  ;;  %v2535_v41 = vld [vmem:[#allocation3 + $0x178] sm:$0xff] }
 0x195   :  { %v613_v0 = vadd.f32 %v1714_v7, %v612_v58  ;;  %v630_v44 = vmul.f32 %v1716_v63, %v628_v59  ;;  %v1718_v4 = vpop.eup %1717  ;;  %vm635_vm7 = vweird.f32 %v1716_v63 }
 0x196   :  { %v598_v54 = vsel %vm597_vm3, %v1712_v1, %v594_v60  ;;  %v638_v1 = vand.u32 2147483647, %v628_v59  ;;  %vm636_vm9 = vmor %vm634_vm8, %vm635_vm7  ;;  %v2484_v59 = vld [vmem:[#allocation3 + $0x1f0] sm:$0xff]  ;;  %v2490_v60 = vld [vmem:[#allocation3 + $0x1c0] sm:$0xff] }
 0x197   :  { %v603_v18 = vsel %vm600_vm5, %v602_v2, %v598_v54  ;;  %v617_v6 = vsel %vm616_vm4, %v1714_v7, %v613_v0  ;;  %v631_v62 = vsub.f32 1.0, %v630_v44  ;;  %v2493_v2 = vld [vmem:[#allocation3 + $0x1c8] sm:$0xff]  ;;  %v2496_v0 = vld [vmem:[#allocation3 + $0x1d0] sm:$0xff]  ;;  %v2499_v44 = vld [vmem:[#allocation3 + $0x1d8] sm:$0xff] }
 0x198   :  { %v622_v8 = vsel %vm619_vm6, %v621_v61, %v617_v6  ;;  %v645_v55 = vmul.f32 %v1718_v4, %v603_v18  ;;  %vm639_vm10 = vcmp.eq.f32.partialorder %v638_v1, 8.507059e+37  ;;  %v2502_v61 = vld [vmem:[#allocation3 + $0x1a0] sm:$0xff]  ;;  %v2505_v54 = vld [vmem:[#allocation3 + $0x1a8] sm:$0xff]  ;;  %v2508_v4 = vld [vmem:[#allocation3 + $0x1b0] sm:$0xff] }
 0x199   :  { %v644_v3 = vmul.f32 %v622_v8, %v2403_v53  ;;  %v632_v37 = vmul.f32 %v1716_v63, %v631_v62  ;;  %v2478_v53 = vld [vmem:[#allocation3 + $0x1e0] sm:$0xff]  ;;  %v2511_v18 = vld [vmem:[#allocation3 + $0x1b8] sm:$0xff]  ;;  %v2517_v62 = vld [vmem:[#allocation3 + $0x188] sm:$0xff] }
 0x19a   :  { %v2514_v6 = vld [vmem:[#allocation3 + $0x180] sm:$0xff]  ;;  %v2520_v8 = vld [vmem:[#allocation3 + $0x190] sm:$0xff] }
 0x19b   :  { %v2475_v57 = vadd.f32 %v645_v55, %v644_v3  ;;  %v633_v31 = vadd.f32 %v1716_v63, %v632_v37  ;;  %v2523_v55 = vld [vmem:[#allocation3 + $0x198] sm:$0xff]  ;;  %v2526_v3 = vld [vmem:[#allocation3 + $0x160] sm:$0xff]  ;;  %v2529_v37 = vld [vmem:[#allocation3 + $0x168] sm:$0xff] }
 0x19c   :  { %v2538_v1 = vld [vmem:[#allocation3 + $0x140] sm:$0xff] }
 0x19d   :  { %1719 = vtanh.f32 %v2475_v57  ;;  %v637_v50 = vsel %vm636_vm9, %v1716_v63, %v633_v31  ;;  %v2487_v63 = vld [vmem:[#allocation3 + $0x1f8] sm:$0xff]  ;;  %v2532_v31 = vld [vmem:[#allocation3 + $0x170] sm:$0xff] }
 0x19e   :  { %v642_v56 = vsel %vm639_vm10, %v641_v51, %v637_v50  ;;  %v2541_v50 = vld [vmem:[#allocation3 + $0x148] sm:$0xff]  ;;  %v2544_v51 = vld [vmem:[#allocation3 + $0x150] sm:$0xff] }
 0x1a3   :  { %v1720_v7 = vpop.eup %1719 }
 0x1a4   :  { %v648_v58 = vmul.f32 %v1720_v7, %v642_v56  ;;  %v2547_v7 = vld [vmem:[#allocation3 + $0x158] sm:$0xff]  ;;  %v2551_v56 = vld [vmem:[#allocation3 + $0x128] sm:$0xff] }
 0x1a6   :  { %672 = vmatmul.f32.vlgmr.msrb.gmra.mxu0 %v648_v58  ;;  %692 = vmatmul.f32.vlgmr.msra.gmra.mxu1 %v648_v58 }
 0x1a7   :  { %712 = vmatmul.f32.vlgmr.msra.gmra.mxu2 %v648_v58  ;;  %732 = vmatmul.f32.vlgmr.msra.gmra.mxu3 %v648_v58  ;;  %v2557_v58 = vld [vmem:[#allocation3 + $0x108] sm:$0xff] }
 0x1a8   :  { %964 = vmatpush.msrb.mxu0 %v2478_v53  ;;  %984 = vmatpush.msra.mxu1 %v2481_v5 }
 0x1a9   :  { %1004 = vmatpush.msra.mxu2 %v2484_v59  ;;  %1024 = vmatpush.msra.mxu3 %v2487_v63 }
 0x1aa   :  { %965 = vmatpush.msrb.mxu0 %v2490_v60  ;;  %985 = vmatpush.msra.mxu1 %v2493_v2 }
 0x1ab   :  { %1005 = vmatpush.msra.mxu2 %v2496_v0  ;;  %1025 = vmatpush.msra.mxu3 %v2499_v44 }
 0x1ac   :  { %966 = vmatpush.msrb.mxu0 %v2502_v61  ;;  %986 = vmatpush.msra.mxu1 %v2505_v54 }
 0x1ad   :  { %1006 = vmatpush.msra.mxu2 %v2508_v4  ;;  %1026 = vmatpush.msra.mxu3 %v2511_v18 }
 0x1ae   :  { %967 = vmatpush.msrb.mxu0 %v2514_v6  ;;  %987 = vmatpush.msra.mxu1 %v2517_v62 }
 0x1af   :  { %1007 = vmatpush.msra.mxu2 %v2520_v8  ;;  %1027 = vmatpush.msra.mxu3 %v2523_v55 }
 0x1b0   :  { %968 = vmatpush.msrb.mxu0 %v2526_v3  ;;  %988 = vmatpush.msra.mxu1 %v2529_v37 }
 0x1b1   :  { %1008 = vmatpush.msra.mxu2 %v2532_v31  ;;  %1028 = vmatpush.msra.mxu3 %v2535_v41 }
 0x1b2   :  { %969 = vmatpush.msrb.mxu0 %v2538_v1  ;;  %989 = vmatpush.msra.mxu1 %v2541_v50 }
 0x1b3   :  { %1009 = vmatpush.msra.mxu2 %v2544_v51  ;;  %1029 = vmatpush.msra.mxu3 %v2547_v7 }
 0x1b4   :  { %970 = vmatpush.msrb.mxu0 %v2059_v36  ;;  %990 = vmatpush.msra.mxu1 %v2551_v56  ;;  %v2563_v36 = vld [vmem:[#allocation3 + $0xe8] sm:$0xff] }
 0x1b5   :  { %1010 = vmatpush.msra.mxu2 %v2067_v39  ;;  %1030 = vmatpush.msra.mxu3 %v2065_v38 }
 0x1b6   :  { %971 = vmatpush.msrb.mxu0 %v2069_v40  ;;  %991 = vmatpush.msra.mxu1 %v2557_v58  ;;  %v3158_v40 = vld [vmem:[#allocation36_spill] sm:$0xff] }
 0x1b7   :  { %1011 = vmatpush.msra.mxu2 %v2079_v43  ;;  %1031 = vmatpush.msra.mxu3 %v2077_v42  ;;  %v3159_v43 = vld [vmem:[#allocation39_spill] sm:$0xff] }
 0x1b8   :  { %972 = vmatpush.msrb.mxu0 %v2088_v45  ;;  %992 = vmatpush.msra.mxu1 %v2563_v36 }
 0x1b9   :  { %1012 = vmatpush.msra.mxu2 %v2098_v48  ;;  %1032 = vmatpush.msra.mxu3 %v2096_v47 }
 0x1ba   :  { %973 = vmatpush.msrb.mxu0 %v2102_v49  ;;  %993 = vmatpush.msra.mxu1 %v2091_v46  ;;  %v3160_v49 = vld [vmem:[#allocation42_spill] sm:$0xff] }
 0x1bb   :  { %1013 = vmatpush.msra.mxu2 %v2110_v52  ;;  %1033 = vmatpush.msra.mxu3 %v3129_v9 }
 0x1bc   :  { %974 = vmatpush.msrb.mxu0 %v3130_v10  ;;  %994 = vmatpush.msra.mxu1 %v3131_v11 }
 0x1bd   :  { %1014 = vmatpush.msra.mxu2 %v3132_v12  ;;  %1034 = vmatpush.msra.mxu3 %v3133_v13 }
 0x1be   :  { %975 = vmatpush.msrb.mxu0 %v3134_v14  ;;  %995 = vmatpush.msra.mxu1 %v3135_v15 }
 0x1bf   :  { %1015 = vmatpush.msra.mxu2 %v3136_v16  ;;  %1035 = vmatpush.msra.mxu3 %v3137_v17 }
 0x1c0   :  { %976 = vmatpush.msrb.mxu0 %v3138_v19  ;;  %996 = vmatpush.msra.mxu1 %v3139_v20  ;;  %v3161_v19 = vld [vmem:[#allocation41_spill] sm:$0xff] }
 0x1c1   :  { %1016 = vmatpush.msra.mxu2 %v3140_v21  ;;  %1036 = vmatpush.msra.mxu3 %v3141_v22 }
 0x1c2   :  { %977 = vmatpush.msrb.mxu0 %v3142_v23  ;;  %997 = vmatpush.msra.mxu1 %v3143_v24 }
 0x1c3   :  { %1017 = vmatpush.msra.mxu2 %v3144_v25  ;;  %1037 = vmatpush.msra.mxu3 %v3145_v26 }
 0x1c4   :  { %978 = vmatpush.msrb.mxu0 %v3146_v27  ;;  %998 = vmatpush.msra.mxu1 %v3147_v28 }
 0x1c5   :  { %1018 = vmatpush.msra.mxu2 %v3148_v29  ;;  %1038 = vmatpush.msra.mxu3 %v3149_v30 }
 0x1c6   :  { %979 = vmatpush.msrb.mxu0 %v3150_v32  ;;  %999 = vmatpush.msra.mxu1 %v3151_v33 }
 0x1c7   :  { %1019 = vmatpush.msra.mxu2 %v3152_v34  ;;  %1039 = vmatpush.msra.mxu3 %v3153_v35 }
 0x223   :  { %v673_v38 = vpop.f32.mrf.mxu0  ;;  %v693_v39 = vpop.f32.mrf.mxu1 }
 0x224   :  { %v736_v42 = vadd.f32 %v673_v38, %v3158_v40  ;;  %v737_v45 = vadd.f32 %v693_v39, %v3159_v43 }
 0x226   :  { %v1664_v46 = vmul.f32 -1.442695, %v736_v42  ;;  %v1665_v47 = vmul.f32 -1.442695, %v737_v45 }
 0x228   :  { %1721 = vpow2.f32 %v1664_v46 }
 0x229   :  { %1723 = vpow2.f32 %v1665_v47 }
 0x22a   :  { %v733_v48 = vpop.f32.mrf.mxu3  ;;  %v713_v14 = vpop.f32.mrf.mxu2 }
 0x22b   :  { %v739_v52 = vadd.f32 %v733_v48, %v3160_v49  ;;  %v738_v20 = vadd.f32 %v713_v14, %v3161_v19 }
 0x22d   :  { %v1666_v9 = vmul.f32 -1.442695, %v739_v52 }
 0x22e   :  { %v1722_v10 = vpop.eup %1721 }
 0x22f   :  { %v1724_v11 = vpop.eup %1723  ;;  %v743_v12 = vadd.f32 1.0, %v1722_v10  ;;  %1725 = vpow2.f32 %v1666_v9 }
 0x230   :  { %v762_v13 = vadd.f32 1.0, %v1724_v11 }
 0x231   :  { %1727 = vrcp.f32 %v743_v12  ;;  %v755_v26 = vand.u32 2147483648, %v743_v12  ;;  %v753_v29 = vand.u32 2147483647, %v743_v12  ;;  %vm749_vm13 = vweird.f32 %v743_v12 }
 0x232   :  { %1729 = vrcp.f32 %v762_v13  ;;  %v774_v27 = vand.u32 2147483648, %v762_v13  ;;  %v772_v32 = vand.u32 2147483647, %v762_v13  ;;  %vm768_vm14 = vweird.f32 %v762_v13 }
 0x233   :  { %v756_v35 = vor.u32 1.1754944e-38, %v755_v26  ;;  %vm754_vm2 = vcmp.eq.f32.partialorder %v753_v29, 8.507059e+37  ;;  %v2652_v26 = vld [vmem:[#allocation3 + $0xf0] sm:$0xff]  ;;  %v2661_v29 = vld [vmem:[#allocation3 + $0xc8] sm:$0xff] }
 0x234   :  { %v775_v40 = vor.u32 1.1754944e-38, %v774_v27  ;;  %vm773_vm3 = vcmp.eq.f32.partialorder %v772_v32, 8.507059e+37  ;;  %v2655_v27 = vld [vmem:[#allocation3 + $0xf8] sm:$0xff] }
 0x235   :  { %v1726_v15 = vpop.eup %1725  ;;  %v2667_v32 = vld [vmem:[#allocation3 + $0xd8] sm:$0xff] }
 0x236   :  { %v782_v16 = vadd.f32 1.0, %v1726_v15  ;;  %3163 = vst [vmem:[#allocation8_spill] sm:$0xff] %v2667_v32 }
 0x237   :  { %v1728_v17 = vpop.eup %1727 }
 0x238   :  { %v1730_v21 = vpop.eup %1729  ;;  %v745_v22 = vmul.f32 %v1728_v17, %v743_v12  ;;  %1731 = vrcp.f32 %v782_v16  ;;  %vm750_vm11 = vweird.f32 %v1728_v17  ;;  %v794_v12 = vand.u32 2147483648, %v782_v16 }
 0x239   :  { %v764_v23 = vmul.f32 %v1730_v21, %v762_v13  ;;  %1733 = vtanh.f32 %v738_v20  ;;  %vm769_vm12 = vweird.f32 %v1730_v21  ;;  %vm751_vm15 = vmor %vm749_vm13, %vm750_vm11  ;;  %vm788_vm5 = vweird.f32 %v782_v16 }
 0x23a   :  { %v746_v24 = vsub.f32 1.0, %v745_v22  ;;  %vm770_vm0 = vmor %vm768_vm14, %vm769_vm12  ;;  %v792_v13 = vand.u32 2147483647, %v782_v16  ;;  %v795_v15 = vor.u32 1.1754944e-38, %v794_v12  ;;  %v2638_v22 = vld [vmem:[#allocation3 + $0x100] sm:$0xff] }
 0x23b   :  { %v765_v25 = vsub.f32 1.0, %v764_v23  ;;  %v2642_v23 = vld [vmem:[#allocation3 + $0x110] sm:$0xff]  ;;  %v2718_v12 = vld [vmem:[#allocation3 + $0x20] sm:$0xff] }
 0x23c   :  { %v747_v28 = vmul.f32 %v1728_v17, %v746_v24  ;;  %vm793_vm7 = vcmp.eq.f32.partialorder %v792_v13, 8.507059e+37  ;;  %v2645_v24 = vld [vmem:[#allocation3 + $0x118] sm:$0xff]  ;;  %3180 = vst [vmem:[#allocation22_spill] sm:$0xff] %v2718_v12  ;;  %v2721_v13 = vld [vmem:[#allocation3 + $0x28] sm:$0xff] }
 0x23d   :  { %v766_v30 = vmul.f32 %v1730_v21, %v765_v25  ;;  %v2648_v25 = vld [vmem:[#allocation3 + $0xe0] sm:$0xff]  ;;  %3181 = vst [vmem:[#allocation28_spill] sm:$0xff] %v2721_v13 }
 0x23e   :  { %v1732_v33 = vpop.eup %1731  ;;  %v748_v34 = vadd.f32 %v1728_v17, %v747_v28  ;;  %v2658_v28 = vld [vmem:[#allocation3 + $0xc0] sm:$0xff] }
 0x23f   :  { %v767_v38 = vadd.f32 %v1730_v21, %v766_v30  ;;  %v784_v39 = vmul.f32 %v1732_v33, %v782_v16  ;;  %v1734_v43 = vpop.eup %1733  ;;  %vm789_vm4 = vweird.f32 %v1732_v33  ;;  %v2632_v16 = vld [vmem:[#allocation3 + $0x130] sm:$0xff] }
 0x240   :  { %v752_v42 = vsel %vm751_vm15, %v1728_v17, %v748_v34  ;;  %vm790_vm6 = vmor %vm788_vm5, %vm789_vm4  ;;  %v2664_v30 = vld [vmem:[#allocation3 + $0xd0] sm:$0xff]  ;;  %v2673_v34 = vld [vmem:[#allocation3 + $0xa8] sm:$0xff] }
 0x241   :  { %v757_v45 = vsel %vm754_vm2, %v756_v35, %v752_v42  ;;  %v771_v46 = vsel %vm770_vm0, %v1730_v21, %v767_v38  ;;  %v785_v47 = vsub.f32 1.0, %v784_v39  ;;  %v2635_v21 = vld [vmem:[#allocation3 + $0x138] sm:$0xff]  ;;  %3162 = vst [vmem:[#allocation7_spill] sm:$0xff] %v2664_v30  ;;  %v2676_v35 = vld [vmem:[#allocation3 + $0xb0] sm:$0xff]  ;;  %v2682_v39 = vld [vmem:[#allocation3 + $0x80] sm:$0xff] }
 0x242   :  { %v776_v48 = vsel %vm773_vm3, %v775_v40, %v771_v46  ;;  %v799_v49 = vmul.f32 %v1734_v43, %v757_v45  ;;  %3165 = vst [vmem:[#allocation11_spill] sm:$0xff] %v2673_v34  ;;  %v2679_v38 = vld [vmem:[#allocation3 + $0xb8] sm:$0xff]  ;;  %v2685_v40 = vld [vmem:[#allocation3 + $0x88] sm:$0xff]  ;;  %v2688_v42 = vld [vmem:[#allocation3 + $0x90] sm:$0xff] }
 0x243   :  { %v798_v52 = vmul.f32 %v776_v48, %v2475_v57  ;;  %v786_v9 = vmul.f32 %v1732_v33, %v785_v47  ;;  %v2628_v57 = vld [vmem:[#allocation3 + $0x120] sm:$0xff]  ;;  %3166 = vst [vmem:[#allocation10_spill] sm:$0xff] %v2676_v35  ;;  %v2691_v43 = vld [vmem:[#allocation3 + $0x98] sm:$0xff]  ;;  %v2697_v46 = vld [vmem:[#allocation3 + $0x68] sm:$0xff] }
 0x244   :  { %3167 = vst [vmem:[#allocation12_spill] sm:$0xff] %v2679_v38  ;;  %v2694_v45 = vld [vmem:[#allocation3 + $0x60] sm:$0xff]  ;;  %v2700_v47 = vld [vmem:[#allocation3 + $0x70] sm:$0xff]  ;;  %v2703_v48 = vld [vmem:[#allocation3 + $0x78] sm:$0xff] }
 0x245   :  { %v2601_v10 = vadd.f32 %v799_v49, %v798_v52  ;;  %v787_v11 = vadd.f32 %v1732_v33, %v786_v9  ;;  %3168 = vst [vmem:[#allocation9_spill] sm:$0xff] %v2682_v39  ;;  %v2706_v49 = vld [vmem:[#allocation3 + $0x40] sm:$0xff]  ;;  %v2709_v52 = vld [vmem:[#allocation3 + $0x48] sm:$0xff]  ;;  %v2712_v9 = vld [vmem:[#allocation3 + $0x50] sm:$0xff] }
 0x246   :  { %3169 = vst [vmem:[#allocation17_spill] sm:$0xff] %v2685_v40 }
 0x247   :  { %1735 = vtanh.f32 %v2601_v10  ;;  %v791_v14 = vsel %vm790_vm6, %v1732_v33, %v787_v11  ;;  %v2670_v33 = vld [vmem:[#allocation3 + $0xa0] sm:$0xff]  ;;  %3170 = vst [vmem:[#allocation15_spill] sm:$0xff] %v2688_v42  ;;  %v2715_v11 = vld [vmem:[#allocation3 + $0x58] sm:$0xff] }
 0x248   :  { %v796_v19 = vsel %vm793_vm7, %v795_v15, %v791_v14  ;;  %3164 = vst [vmem:[#allocation6_spill] sm:$0xff] %v2670_v33  ;;  %v2724_v14 = vld [vmem:[#allocation3 + $0x30] sm:$0xff]  ;;  %v2727_v15 = vld [vmem:[#allocation3 + $0x38] sm:$0xff] }
 0x249   :  { %3171 = vst [vmem:[#allocation13_spill] sm:$0xff] %v2691_v43 }
 0x24a   :  { %3172 = vst [vmem:[#allocation14_spill] sm:$0xff] %v2694_v45 }
 0x24b   :  { %3173 = vst [vmem:[#allocation21_spill] sm:$0xff] %v2697_v46 }
 0x24c   :  { %3174 = vst [vmem:[#allocation19_spill] sm:$0xff] %v2700_v47 }
 0x24d   :  { %v1736_v17 = vpop.eup %1735  ;;  %3175 = vst [vmem:[#allocation16_spill] sm:$0xff] %v2703_v48 }
 0x24e   :  { %v802_v20 = vmul.f32 %v1736_v17, %v796_v19  ;;  %3176 = vst [vmem:[#allocation18_spill] sm:$0xff] %v2706_v49  ;;  %v2730_v17 = vld [vmem:[#allocation3] sm:$0xff]  ;;  %v2733_v19 = vld [vmem:[#allocation3 + $0x8] sm:$0xff] }
 0x24f   :  { %3177 = vst [vmem:[#allocation25_spill] sm:$0xff] %v2709_v52 }
 0x250   :  { %826 = vmatmul.f32.vlgmr.msra.gmra.mxu0 %v802_v20  ;;  %846 = vmatmul.f32.vlgmr.msrb.gmra.mxu1 %v802_v20  ;;  %3178 = vst [vmem:[#allocation23_spill] sm:$0xff] %v2712_v9 }
 0x251   :  { %866 = vmatmul.f32.vlgmr.msrb.gmra.mxu2 %v802_v20  ;;  %886 = vmatmul.f32.vlgmr.msrb.gmra.mxu3 %v802_v20  ;;  %3179 = vst [vmem:[#allocation20_spill] sm:$0xff] %v2715_v11  ;;  %v2736_v20 = vld [vmem:[#allocation3 + $0x10] sm:$0xff] }
 0x252   :  { %1118 = vmatpush.msra.mxu0 %v2478_v53  ;;  %1138 = vmatpush.msrb.mxu1 %v2481_v5  ;;  %3182 = vst [vmem:[#allocation27_spill] sm:$0xff] %v2724_v14 }
 0x253   :  { %1158 = vmatpush.msrb.mxu2 %v2484_v59  ;;  %1178 = vmatpush.msrb.mxu3 %v2487_v63  ;;  %3183 = vst [vmem:[#allocation24_spill] sm:$0xff] %v2727_v15 }
 0x254   :  { %1119 = vmatpush.msra.mxu0 %v2490_v60  ;;  %1139 = vmatpush.msrb.mxu1 %v2493_v2  ;;  %3184 = vst [vmem:[#allocation26_spill] sm:$0xff] %v2730_v17 }
 0x255   :  { %1159 = vmatpush.msrb.mxu2 %v2496_v0  ;;  %1179 = vmatpush.msrb.mxu3 %v2499_v44  ;;  %3185 = vst [vmem:[#allocation30_spill] sm:$0xff] %v2733_v19 }
 0x256   :  { %1120 = vmatpush.msra.mxu0 %v2502_v61  ;;  %1140 = vmatpush.msrb.mxu1 %v2505_v54  ;;  %3186 = vst [vmem:[#allocation29_spill] sm:$0xff] %v2736_v20 }
 0x257   :  { %1160 = vmatpush.msrb.mxu2 %v2508_v4  ;;  %1180 = vmatpush.msrb.mxu3 %v2511_v18 }
 0x258   :  { %1121 = vmatpush.msra.mxu0 %v2514_v6  ;;  %1141 = vmatpush.msrb.mxu1 %v2517_v62 }
 0x259   :  { %1161 = vmatpush.msrb.mxu2 %v2520_v8  ;;  %1181 = vmatpush.msrb.mxu3 %v2523_v55 }
 0x25a   :  { %1122 = vmatpush.msra.mxu0 %v2526_v3  ;;  %1142 = vmatpush.msrb.mxu1 %v2529_v37 }
 0x25b   :  { %1162 = vmatpush.msrb.mxu2 %v2532_v31  ;;  %1182 = vmatpush.msrb.mxu3 %v2535_v41 }
 0x25c   :  { %1123 = vmatpush.msra.mxu0 %v2538_v1  ;;  %1143 = vmatpush.msrb.mxu1 %v2541_v50 }
 0x25d   :  { %1163 = vmatpush.msrb.mxu2 %v2544_v51  ;;  %1183 = vmatpush.msrb.mxu3 %v2547_v7 }
 0x25e   :  { %1124 = vmatpush.msra.mxu0 %v2628_v57  ;;  %1144 = vmatpush.msrb.mxu1 %v2551_v56 }
 0x25f   :  { %1164 = vmatpush.msrb.mxu2 %v2632_v16  ;;  %1184 = vmatpush.msrb.mxu3 %v2635_v21 }
 0x260   :  { %1125 = vmatpush.msra.mxu0 %v2638_v22  ;;  %1145 = vmatpush.msrb.mxu1 %v2557_v58 }
 0x261   :  { %1165 = vmatpush.msrb.mxu2 %v2642_v23  ;;  %1185 = vmatpush.msrb.mxu3 %v2645_v24 }
 0x262   :  { %1126 = vmatpush.msra.mxu0 %v2648_v25  ;;  %1146 = vmatpush.msrb.mxu1 %v2563_v36 }
 0x263   :  { %1166 = vmatpush.msrb.mxu2 %v2652_v26  ;;  %1186 = vmatpush.msrb.mxu3 %v2655_v27 }
 0x264   :  { %1127 = vmatpush.msra.mxu0 %v2658_v28  ;;  %1147 = vmatpush.msrb.mxu1 %v2661_v29 }
 0x265   :  { %1167 = vmatpush.msrb.mxu2 %v2664_v30  ;;  %1187 = vmatpush.msrb.mxu3 %v2667_v32 }
 0x266   :  { %1128 = vmatpush.msra.mxu0 %v2670_v33  ;;  %1148 = vmatpush.msrb.mxu1 %v2673_v34 }
 0x267   :  { %1168 = vmatpush.msrb.mxu2 %v2676_v35  ;;  %1188 = vmatpush.msrb.mxu3 %v2679_v38 }
 0x268   :  { %1129 = vmatpush.msra.mxu0 %v2682_v39  ;;  %1149 = vmatpush.msrb.mxu1 %v2685_v40 }
 0x269   :  { %1169 = vmatpush.msrb.mxu2 %v2688_v42  ;;  %1189 = vmatpush.msrb.mxu3 %v2691_v43 }
 0x26a   :  { %1130 = vmatpush.msra.mxu0 %v2694_v45  ;;  %1150 = vmatpush.msrb.mxu1 %v2697_v46 }
 0x26b   :  { %1170 = vmatpush.msrb.mxu2 %v2700_v47  ;;  %1190 = vmatpush.msrb.mxu3 %v2703_v48 }
 0x26c   :  { %1131 = vmatpush.msra.mxu0 %v2706_v49  ;;  %1151 = vmatpush.msrb.mxu1 %v2709_v52 }
 0x26d   :  { %1171 = vmatpush.msrb.mxu2 %v2712_v9  ;;  %1191 = vmatpush.msrb.mxu3 %v2715_v11  ;;  %v3188_v11 = vld [vmem:[#allocation40_spill] sm:$0xff]  ;;  %v3189_v9 = vld [vmem:[#allocation43_spill] sm:$0xff] }
 0x26e   :  { %1132 = vmatpush.msra.mxu0 %v2718_v12  ;;  %1152 = vmatpush.msrb.mxu1 %v2721_v13  ;;  %v2739_v13 = vld [vmem:[#allocation3 + $0x18] sm:$0xff] }
 0x26f   :  { %1172 = vmatpush.msrb.mxu2 %v2724_v14  ;;  %1192 = vmatpush.msrb.mxu3 %v2727_v15  ;;  %3187 = vst [vmem:[#allocation34_spill] sm:$0xff] %v2739_v13 }
 0x270   :  { %1133 = vmatpush.msra.mxu0 %v2730_v17  ;;  %1153 = vmatpush.msrb.mxu1 %v2733_v19  ;;  %v3190_v19 = vld [vmem:[#allocation46_spill] sm:$0xff] }
 0x271   :  { %1173 = vmatpush.msrb.mxu2 %v2736_v20  ;;  %1193 = vmatpush.msrb.mxu3 %v2739_v13 }
 0x2cd   :  { %v827_v14 = vpop.f32.mrf.mxu0  ;;  %v847_v12 = vpop.f32.mrf.mxu1 }
 0x2ce   :  { %v890_v15 = vadd.f32 %v827_v14, %v3188_v11  ;;  %v891_v52 = vadd.f32 %v847_v12, %v3189_v9  ;;  %v3191_v9 = vld [vmem:[#allocation45_spill] sm:$0xff] }
 0x2d0   :  { %v1667_v49 = vmul.f32 -1.442695, %v890_v15  ;;  %v1668_v17 = vmul.f32 -1.442695, %v891_v52 }
 0x2d2   :  { %1737 = vpow2.f32 %v1667_v49 }
 0x2d3   :  { %1739 = vpow2.f32 %v1668_v17 }
 0x2d4   :  { %v887_v48 = vpop.f32.mrf.mxu3  ;;  %v867_v13 = vpop.f32.mrf.mxu2 }
 0x2d5   :  { %v893_v47 = vadd.f32 %v887_v48, %v3190_v19  ;;  %v892_v12 = vadd.f32 %v867_v13, %v3191_v9 }
 0x2d7   :  { %v1669_v46 = vmul.f32 -1.442695, %v893_v47 }
 0x2d8   :  { %v1738_v45 = vpop.eup %1737 }
 0x2d9   :  { %v1740_v20 = vpop.eup %1739  ;;  %v897_v43 = vadd.f32 1.0, %v1738_v45  ;;  %1741 = vpow2.f32 %v1669_v46 }
 0x2da   :  { %v916_v42 = vadd.f32 1.0, %v1740_v20 }
 0x2db   :  { %1743 = vrcp.f32 %v897_v43  ;;  %v909_v47 = vand.u32 2147483648, %v897_v43  ;;  %v907_v46 = vand.u32 2147483647, %v897_v43  ;;  %vm903_vm10 = vweird.f32 %v897_v43 }
 0x2dc   :  { %1745 = vrcp.f32 %v916_v42  ;;  %v928_v19 = vand.u32 2147483648, %v916_v42  ;;  %v926_v39 = vand.u32 2147483647, %v916_v42  ;;  %vm922_vm11 = vweird.f32 %v916_v42 }
 0x2dd   :  { %v910_v13 = vor.u32 1.1754944e-38, %v909_v47  ;;  %vm908_vm14 = vcmp.eq.f32.partialorder %v907_v46, 8.507059e+37 }
 0x2de   :  { %vm927_vm15 = vcmp.eq.f32.partialorder %v926_v39, 8.507059e+37 }
 0x2df   :  { %v1742_v40 = vpop.eup %1741 }
 0x2e0   :  { %v936_v11 = vadd.f32 1.0, %v1742_v40 }
 0x2e1   :  { %v1744_v14 = vpop.eup %1743 }
 0x2e2   :  { %v1746_v52 = vpop.eup %1745  ;;  %v899_v49 = vmul.f32 %v1744_v14, %v897_v43  ;;  %1747 = vrcp.f32 %v936_v11  ;;  %vm904_vm8 = vweird.f32 %v1744_v14  ;;  %v948_v47 = vand.u32 2147483648, %v936_v11 }
 0x2e3   :  { %v918_v15 = vmul.f32 %v1746_v52, %v916_v42  ;;  %1749 = vtanh.f32 %v892_v12  ;;  %vm923_vm9 = vweird.f32 %v1746_v52  ;;  %vm905_vm12 = vmor %vm903_vm10, %vm904_vm8  ;;  %vm942_vm2 = vweird.f32 %v936_v11 }
 0x2e4   :  { %v900_v17 = vsub.f32 1.0, %v899_v49  ;;  %vm924_vm13 = vmor %vm922_vm11, %vm923_vm9  ;;  %v929_v49 = vor.u32 1.1754944e-38, %v928_v19  ;;  %v949_v46 = vor.u32 1.1754944e-38, %v948_v47  ;;  %v3210_v47 = vld [vmem:[#allocation22_spill] sm:$0xff] }
 0x2e5   :  { %v919_v48 = vsub.f32 1.0, %v918_v15 }
 0x2e6   :  { %v901_v45 = vmul.f32 %v1744_v14, %v900_v17 }
 0x2e7   :  { %v920_v20 = vmul.f32 %v1746_v52, %v919_v48 }
 0x2e8   :  { %v1748_v38 = vpop.eup %1747  ;;  %v902_v40 = vadd.f32 %v1744_v14, %v901_v45 }
 0x2e9   :  { %v921_v9 = vadd.f32 %v1746_v52, %v920_v20  ;;  %v938_v35 = vmul.f32 %v1748_v38, %v936_v11  ;;  %v1750_v12 = vpop.eup %1749  ;;  %vm943_vm0 = vweird.f32 %v1748_v38  ;;  %v3199_v20 = vld [vmem:[#allocation17_spill] sm:$0xff] }
 0x2ea   :  { %v906_v15 = vsel %vm905_vm12, %v1744_v14, %v902_v40  ;;  %v946_v14 = vand.u32 2147483647, %v936_v11  ;;  %vm944_vm3 = vmor %vm942_vm2, %vm943_vm0  ;;  %v3198_v11 = vld [vmem:[#allocation9_spill] sm:$0xff]  ;;  %v3200_v40 = vld [vmem:[#allocation15_spill] sm:$0xff] }
 0x2eb   :  { %v911_v34 = vsel %vm908_vm14, %v910_v13, %v906_v15  ;;  %v925_v17 = vsel %vm924_vm13, %v1746_v52, %v921_v9  ;;  %v939_v33 = vsub.f32 1.0, %v938_v35  ;;  %v3201_v13 = vld [vmem:[#allocation13_spill] sm:$0xff]  ;;  %v3202_v9 = vld [vmem:[#allocation14_spill] sm:$0xff]  ;;  %v3204_v15 = vld [vmem:[#allocation19_spill] sm:$0xff] }
 0x2ec   :  { %v930_v48 = vsel %vm927_vm15, %v929_v49, %v925_v17  ;;  %v953_v32 = vmul.f32 %v1750_v12, %v911_v34  ;;  %vm947_vm4 = vcmp.eq.f32.partialorder %v946_v14, 8.507059e+37  ;;  %v3196_v34 = vld [vmem:[#allocation10_spill] sm:$0xff]  ;;  %v3203_v49 = vld [vmem:[#allocation21_spill] sm:$0xff]  ;;  %v3205_v12 = vld [vmem:[#allocation16_spill] sm:$0xff] }
 0x2ed   :  { %v952_v30 = vmul.f32 %v930_v48, %v2601_v10  ;;  %v940_v45 = vmul.f32 %v1748_v38, %v939_v33  ;;  %v3192_v10 = vld [vmem:[#allocation7_spill] sm:$0xff]  ;;  %v3206_v17 = vld [vmem:[#allocation18_spill] sm:$0xff]  ;;  %v3207_v48 = vld [vmem:[#allocation25_spill] sm:$0xff] }
 0x2ee   :  { %v3195_v33 = vld [vmem:[#allocation11_spill] sm:$0xff]  ;;  %v3211_v14 = vld [vmem:[#allocation28_spill] sm:$0xff] }
 0x2ef   :  { %v2747_v43 = vadd.f32 %v953_v32, %v952_v30  ;;  %v941_v42 = vadd.f32 %v1748_v38, %v940_v45  ;;  %v3193_v30 = vld [vmem:[#allocation8_spill] sm:$0xff]  ;;  %v3194_v32 = vld [vmem:[#allocation6_spill] sm:$0xff]  ;;  %v3208_v45 = vld [vmem:[#allocation23_spill] sm:$0xff] }
 0x2f1   :  { %1751 = vtanh.f32 %v2747_v43  ;;  %v945_v19 = vsel %vm944_vm3, %v1748_v38, %v941_v42  ;;  %v3197_v38 = vld [vmem:[#allocation12_spill] sm:$0xff] }
 0x2f2   :  { %v950_v35 = vsel %vm947_vm4, %v949_v46, %v945_v19  ;;  %v3209_v42 = vld [vmem:[#allocation20_spill] sm:$0xff]  ;;  %v3212_v19 = vld [vmem:[#allocation27_spill] sm:$0xff] }
 0x2f3   :  { %v3213_v46 = vld [vmem:[#allocation24_spill] sm:$0xff] }
 0x2f7   :  { %v1752_v39 = vpop.eup %1751 }
 0x2f8   :  { %v956_v52 = vmul.f32 %v1752_v39, %v950_v35  ;;  %v3214_v39 = vld [vmem:[#allocation26_spill] sm:$0xff] }
 0x2f9   :  { %v3215_v35 = vld [vmem:[#allocation30_spill] sm:$0xff] }
 0x2fa   :  { %980 = vmatmul.f32.vlgmr.msrb.gmra.mxu0 %v956_v52  ;;  %1000 = vmatmul.f32.vlgmr.msra.gmra.mxu1 %v956_v52 }
 0x2fb   :  { %1020 = vmatmul.f32.vlgmr.msra.gmra.mxu2 %v956_v52  ;;  %1040 = vmatmul.f32.vlgmr.msra.gmra.mxu3 %v956_v52  ;;  %v3216_v52 = vld [vmem:[#allocation29_spill] sm:$0xff] }
 0x2fc   :  { %1272 = vmatpush.msrb.mxu0 %v2478_v53  ;;  %1292 = vmatpush.msra.mxu1 %v2481_v5 }
 0x2fd   :  { %1312 = vmatpush.msra.mxu2 %v2484_v59  ;;  %1332 = vmatpush.msra.mxu3 %v2487_v63 }
 0x2fe   :  { %1273 = vmatpush.msrb.mxu0 %v2490_v60  ;;  %1293 = vmatpush.msra.mxu1 %v2493_v2 }
 0x2ff   :  { %1313 = vmatpush.msra.mxu2 %v2496_v0  ;;  %1333 = vmatpush.msra.mxu3 %v2499_v44 }
 0x300   :  { %1274 = vmatpush.msrb.mxu0 %v2502_v61  ;;  %1294 = vmatpush.msra.mxu1 %v2505_v54 }
 0x301   :  { %1314 = vmatpush.msra.mxu2 %v2508_v4  ;;  %1334 = vmatpush.msra.mxu3 %v2511_v18 }
 0x302   :  { %1275 = vmatpush.msrb.mxu0 %v2514_v6  ;;  %1295 = vmatpush.msra.mxu1 %v2517_v62 }
 0x303   :  { %1315 = vmatpush.msra.mxu2 %v2520_v8  ;;  %1335 = vmatpush.msra.mxu3 %v2523_v55 }
 0x304   :  { %1276 = vmatpush.msrb.mxu0 %v2526_v3  ;;  %1296 = vmatpush.msra.mxu1 %v2529_v37 }
 0x305   :  { %1316 = vmatpush.msra.mxu2 %v2532_v31  ;;  %1336 = vmatpush.msra.mxu3 %v2535_v41 }
 0x306   :  { %1277 = vmatpush.msrb.mxu0 %v2538_v1  ;;  %1297 = vmatpush.msra.mxu1 %v2541_v50 }
 0x307   :  { %1317 = vmatpush.msra.mxu2 %v2544_v51  ;;  %1337 = vmatpush.msra.mxu3 %v2547_v7 }
 0x308   :  { %1278 = vmatpush.msrb.mxu0 %v2628_v57  ;;  %1298 = vmatpush.msra.mxu1 %v2551_v56 }
 0x309   :  { %1318 = vmatpush.msra.mxu2 %v2632_v16  ;;  %1338 = vmatpush.msra.mxu3 %v2635_v21 }
 0x30a   :  { %1279 = vmatpush.msrb.mxu0 %v2638_v22  ;;  %1299 = vmatpush.msra.mxu1 %v2557_v58 }
 0x30b   :  { %1319 = vmatpush.msra.mxu2 %v2642_v23  ;;  %1339 = vmatpush.msra.mxu3 %v2645_v24 }
 0x30c   :  { %1280 = vmatpush.msrb.mxu0 %v2648_v25  ;;  %1300 = vmatpush.msra.mxu1 %v2563_v36 }
 0x30d   :  { %1320 = vmatpush.msra.mxu2 %v2652_v26  ;;  %1340 = vmatpush.msra.mxu3 %v2655_v27 }
 0x30e   :  { %1281 = vmatpush.msrb.mxu0 %v2658_v28  ;;  %1301 = vmatpush.msra.mxu1 %v2661_v29 }
 0x30f   :  { %1321 = vmatpush.msra.mxu2 %v3192_v10  ;;  %1341 = vmatpush.msra.mxu3 %v3193_v30 }
 0x310   :  { %1282 = vmatpush.msrb.mxu0 %v3194_v32  ;;  %1302 = vmatpush.msra.mxu1 %v3195_v33 }
 0x311   :  { %1322 = vmatpush.msra.mxu2 %v3196_v34  ;;  %1342 = vmatpush.msra.mxu3 %v3197_v38 }
 0x312   :  { %1283 = vmatpush.msrb.mxu0 %v3198_v11  ;;  %1303 = vmatpush.msra.mxu1 %v3199_v20 }
 0x313   :  { %1323 = vmatpush.msra.mxu2 %v3200_v40  ;;  %1343 = vmatpush.msra.mxu3 %v3201_v13 }
 0x314   :  { %1284 = vmatpush.msrb.mxu0 %v3202_v9  ;;  %1304 = vmatpush.msra.mxu1 %v3203_v49 }
 0x315   :  { %1324 = vmatpush.msra.mxu2 %v3204_v15  ;;  %1344 = vmatpush.msra.mxu3 %v3205_v12  ;;  %v3218_v12 = vld [vmem:[#allocation44_spill] sm:$0xff]  ;;  %v3219_v15 = vld [vmem:[#allocation47_spill] sm:$0xff] }
 0x316   :  { %1285 = vmatpush.msrb.mxu0 %v3206_v17  ;;  %1305 = vmatpush.msra.mxu1 %v3207_v48  ;;  %v3217_v17 = vld [vmem:[#allocation34_spill] sm:$0xff] }
 0x317   :  { %1325 = vmatpush.msra.mxu2 %v3208_v45  ;;  %1345 = vmatpush.msra.mxu3 %v3209_v42 }
 0x318   :  { %1286 = vmatpush.msrb.mxu0 %v3210_v47  ;;  %1306 = vmatpush.msra.mxu1 %v3211_v14 }
 0x319   :  { %1326 = vmatpush.msra.mxu2 %v3212_v19  ;;  %1346 = vmatpush.msra.mxu3 %v3213_v46  ;;  %v3220_v46 = vld [vmem:[#allocation49_spill] sm:$0xff] }
 0x31a   :  { %1287 = vmatpush.msrb.mxu0 %v3214_v39  ;;  %1307 = vmatpush.msra.mxu1 %v3215_v35 }
 0x31b   :  { %1327 = vmatpush.msra.mxu2 %v3216_v52  ;;  %1347 = vmatpush.msra.mxu3 %v3217_v17 }
 0x377   :  { %v981_v48 = vpop.f32.mrf.mxu0  ;;  %v1001_v45 = vpop.f32.mrf.mxu1 }
 0x378   :  { %v1044_v42 = vadd.f32 %v981_v48, %v3218_v12  ;;  %v1045_v47 = vadd.f32 %v1001_v45, %v3219_v15  ;;  %v3221_v15 = vld [vmem:[#allocation48_spill] sm:$0xff] }
 0x37a   :  { %v1670_v49 = vmul.f32 -1.442695, %v1044_v42  ;;  %v1671_v14 = vmul.f32 -1.442695, %v1045_v47 }
 0x37c   :  { %1753 = vpow2.f32 %v1670_v49 }
 0x37d   :  { %1755 = vpow2.f32 %v1671_v14 }
 0x37e   :  { %v1041_v19 = vpop.f32.mrf.mxu3  ;;  %v1021_v17 = vpop.f32.mrf.mxu2 }
 0x37f   :  { %v1047_v9 = vadd.f32 %v1041_v19, %v3220_v46  ;;  %v1046_v45 = vadd.f32 %v1021_v17, %v3221_v15 }
 0x381   :  { %v1672_v39 = vmul.f32 -1.442695, %v1047_v9 }
 0x382   :  { %v1754_v13 = vpop.eup %1753 }
 0x383   :  { %v1756_v35 = vpop.eup %1755  ;;  %v1051_v40 = vadd.f32 1.0, %v1754_v13  ;;  %1757 = vpow2.f32 %v1672_v39 }
 0x384   :  { %v1070_v52 = vadd.f32 1.0, %v1756_v35 }
 0x385   :  { %1759 = vrcp.f32 %v1051_v40  ;;  %v1063_v9 = vand.u32 2147483648, %v1051_v40  ;;  %v1061_v39 = vand.u32 2147483647, %v1051_v40  ;;  %vm1057_vm7 = vweird.f32 %v1051_v40 }
 0x386   :  { %1761 = vrcp.f32 %v1070_v52  ;;  %v1082_v46 = vand.u32 2147483648, %v1070_v52  ;;  %v1080_v11 = vand.u32 2147483647, %v1070_v52  ;;  %vm1076_vm8 = vweird.f32 %v1070_v52 }
 0x387   :  { %v1064_v17 = vor.u32 1.1754944e-38, %v1063_v9  ;;  %vm1062_vm11 = vcmp.eq.f32.partialorder %v1061_v39, 8.507059e+37 }
 0x388   :  { %vm1081_vm12 = vcmp.eq.f32.partialorder %v1080_v11, 8.507059e+37 }
 0x389   :  { %v1758_v20 = vpop.eup %1757 }
 0x38a   :  { %v1090_v12 = vadd.f32 1.0, %v1758_v20 }
 0x38b   :  { %v1760_v48 = vpop.eup %1759 }
 0x38c   :  { %v1762_v42 = vpop.eup %1761  ;;  %v1053_v49 = vmul.f32 %v1760_v48, %v1051_v40  ;;  %1763 = vrcp.f32 %v1090_v12  ;;  %vm1058_vm5 = vweird.f32 %v1760_v48  ;;  %v1102_v9 = vand.u32 2147483648, %v1090_v12 }
 0x38d   :  { %v1072_v47 = vmul.f32 %v1762_v42, %v1070_v52  ;;  %1765 = vtanh.f32 %v1046_v45  ;;  %vm1077_vm6 = vweird.f32 %v1762_v42  ;;  %vm1059_vm9 = vmor %vm1057_vm7, %vm1058_vm5  ;;  %vm1096_vm14 = vweird.f32 %v1090_v12 }
 0x38e   :  { %v1054_v14 = vsub.f32 1.0, %v1053_v49  ;;  %vm1078_vm10 = vmor %vm1076_vm8, %vm1077_vm6  ;;  %v1083_v49 = vor.u32 1.1754944e-38, %v1082_v46  ;;  %v1103_v39 = vor.u32 1.1754944e-38, %v1102_v9 }
 0x38f   :  { %v1073_v19 = vsub.f32 1.0, %v1072_v47 }
 0x390   :  { %v1055_v13 = vmul.f32 %v1760_v48, %v1054_v14 }
 0x391   :  { %v1074_v35 = vmul.f32 %v1762_v42, %v1073_v19 }
 0x392   :  { %v1764_v38 = vpop.eup %1763  ;;  %v1056_v20 = vadd.f32 %v1760_v48, %v1055_v13 }
 0x393   :  { %v1075_v15 = vadd.f32 %v1762_v42, %v1074_v35  ;;  %v1092_v34 = vmul.f32 %v1764_v38, %v1090_v12  ;;  %v1766_v45 = vpop.eup %1765  ;;  %vm1097_vm13 = vweird.f32 %v1764_v38 }
 0x394   :  { %v1060_v47 = vsel %vm1059_vm9, %v1760_v48, %v1056_v20  ;;  %v1100_v48 = vand.u32 2147483647, %v1090_v12  ;;  %vm1098_vm15 = vmor %vm1096_vm14, %vm1097_vm13  ;;  %v3251_v20 = vld [vmem:[#allocation51_spill] sm:$0xff] }
 0x395   :  { %v1065_v33 = vsel %vm1062_vm11, %v1064_v17, %v1060_v47  ;;  %v1079_v14 = vsel %vm1078_vm10, %v1762_v42, %v1075_v15  ;;  %v1093_v32 = vsub.f32 1.0, %v1092_v34 }
 0x396   :  { %v1084_v19 = vsel %vm1081_vm12, %v1083_v49, %v1079_v14  ;;  %v1107_v30 = vmul.f32 %v1766_v45, %v1065_v33  ;;  %vm1101_vm0 = vcmp.eq.f32.partialorder %v1100_v48, 8.507059e+37 }
 0x397   :  { %v1106_v10 = vmul.f32 %v1084_v19, %v2747_v43  ;;  %v1094_v13 = vmul.f32 %v1764_v38, %v1093_v32 }
 0x399   :  { %v2819_v40 = vadd.f32 %v1107_v30, %v1106_v10  ;;  %v1095_v52 = vadd.f32 %v1764_v38, %v1094_v13 }
 0x39b   :  { %1767 = vtanh.f32 %v2819_v40  ;;  %v1099_v46 = vsel %vm1098_vm15, %v1764_v38, %v1095_v52 }
 0x39c   :  { %v1104_v34 = vsel %vm1101_vm0, %v1103_v39, %v1099_v46 }
 0x3a1   :  { %v1768_v11 = vpop.eup %1767 }
 0x3a2   :  { %v1110_v42 = vmul.f32 %v1768_v11, %v1104_v34 }
 0x3a4   :  { %1134 = vmatmul.f32.vlgmr.msra.gmra.mxu0 %v1110_v42  ;;  %1154 = vmatmul.f32.vlgmr.msrb.gmra.mxu1 %v1110_v42 }
 0x3a5   :  { %1174 = vmatmul.f32.vlgmr.msrb.gmra.mxu2 %v1110_v42  ;;  %1194 = vmatmul.f32.vlgmr.msrb.gmra.mxu3 %v1110_v42 }
 0x3a6   :  { %1426 = vmatpush.msra.mxu0 %v2478_v53  ;;  %1446 = vmatpush.msrb.mxu1 %v2481_v5  ;;  %v3222_v53 = vld [vmem:[#allocation7_spill] sm:$0xff]  ;;  %v3223_v5 = vld [vmem:[#allocation8_spill] sm:$0xff] }
 0x3a7   :  { %1466 = vmatpush.msrb.mxu2 %v2484_v59  ;;  %1486 = vmatpush.msrb.mxu3 %v2487_v63  ;;  %v3224_v59 = vld [vmem:[#allocation6_spill] sm:$0xff]  ;;  %v3225_v63 = vld [vmem:[#allocation11_spill] sm:$0xff] }
 0x3a8   :  { %1427 = vmatpush.msra.mxu0 %v2490_v60  ;;  %1447 = vmatpush.msrb.mxu1 %v2493_v2  ;;  %v3226_v60 = vld [vmem:[#allocation10_spill] sm:$0xff]  ;;  %v3227_v2 = vld [vmem:[#allocation12_spill] sm:$0xff] }
 0x3a9   :  { %1467 = vmatpush.msrb.mxu2 %v2496_v0  ;;  %1487 = vmatpush.msrb.mxu3 %v2499_v44  ;;  %v3228_v0 = vld [vmem:[#allocation9_spill] sm:$0xff] }
 0x3aa   :  { %1428 = vmatpush.msra.mxu0 %v2502_v61  ;;  %1448 = vmatpush.msrb.mxu1 %v2505_v54  ;;  %v3229_v44 = vld [vmem:[#allocation17_spill] sm:$0xff]  ;;  %v3230_v61 = vld [vmem:[#allocation15_spill] sm:$0xff] }
 0x3ab   :  { %1468 = vmatpush.msrb.mxu2 %v2508_v4  ;;  %1488 = vmatpush.msrb.mxu3 %v2511_v18  ;;  %v3231_v54 = vld [vmem:[#allocation13_spill] sm:$0xff]  ;;  %v3232_v4 = vld [vmem:[#allocation14_spill] sm:$0xff] }
 0x3ac   :  { %1429 = vmatpush.msra.mxu0 %v2514_v6  ;;  %1449 = vmatpush.msrb.mxu1 %v2517_v62  ;;  %v3233_v18 = vld [vmem:[#allocation21_spill] sm:$0xff]  ;;  %v3234_v6 = vld [vmem:[#allocation19_spill] sm:$0xff]  ;;  %v3235_v62 = vld [vmem:[#allocation16_spill] sm:$0xff] }
 0x3ad   :  { %1469 = vmatpush.msrb.mxu2 %v2520_v8  ;;  %1489 = vmatpush.msrb.mxu3 %v2523_v55  ;;  %v3236_v8 = vld [vmem:[#allocation18_spill] sm:$0xff]  ;;  %v3237_v55 = vld [vmem:[#allocation25_spill] sm:$0xff] }
 0x3ae   :  { %1430 = vmatpush.msra.mxu0 %v2526_v3  ;;  %1450 = vmatpush.msrb.mxu1 %v2529_v37  ;;  %v3238_v3 = vld [vmem:[#allocation23_spill] sm:$0xff]  ;;  %v3239_v37 = vld [vmem:[#allocation20_spill] sm:$0xff] }
 0x3af   :  { %1470 = vmatpush.msrb.mxu2 %v2532_v31  ;;  %1490 = vmatpush.msrb.mxu3 %v2535_v41  ;;  %v3240_v31 = vld [vmem:[#allocation22_spill] sm:$0xff]  ;;  %v3241_v41 = vld [vmem:[#allocation28_spill] sm:$0xff] }
 0x3b0   :  { %1431 = vmatpush.msra.mxu0 %v2538_v1  ;;  %1451 = vmatpush.msrb.mxu1 %v2541_v50  ;;  %v3242_v1 = vld [vmem:[#allocation27_spill] sm:$0xff]  ;;  %v3243_v50 = vld [vmem:[#allocation24_spill] sm:$0xff] }
 0x3b1   :  { %1471 = vmatpush.msrb.mxu2 %v2544_v51  ;;  %1491 = vmatpush.msrb.mxu3 %v2547_v7  ;;  %v3244_v51 = vld [vmem:[#allocation26_spill] sm:$0xff] }
 0x3b2   :  { %1432 = vmatpush.msra.mxu0 %v2628_v57  ;;  %1452 = vmatpush.msrb.mxu1 %v2551_v56  ;;  %v3245_v7 = vld [vmem:[#allocation30_spill] sm:$0xff]  ;;  %v3246_v56 = vld [vmem:[#allocation29_spill] sm:$0xff] }
 0x3b3   :  { %1472 = vmatpush.msrb.mxu2 %v2632_v16  ;;  %1492 = vmatpush.msrb.mxu3 %v2635_v21  ;;  %v3248_v16 = vld [vmem:[#allocation31_spill] sm:$0xff] }
 0x3b4   :  { %1433 = vmatpush.msra.mxu0 %v2638_v22  ;;  %1453 = vmatpush.msrb.mxu1 %v2557_v58  ;;  %v3247_v58 = vld [vmem:[#allocation34_spill] sm:$0xff] }
 0x3b5   :  { %1473 = vmatpush.msrb.mxu2 %v2642_v23  ;;  %1493 = vmatpush.msrb.mxu3 %v2645_v24  ;;  %v3249_v22 = vld [vmem:[#allocation50_spill] sm:$0xff] }
 0x3b6   :  { %1434 = vmatpush.msra.mxu0 %v2648_v25  ;;  %1454 = vmatpush.msrb.mxu1 %v2563_v36 }
 0x3b7   :  { %1474 = vmatpush.msrb.mxu2 %v2652_v26  ;;  %1494 = vmatpush.msrb.mxu3 %v2655_v27  ;;  %v3250_v27 = vld [vmem:[#allocation52_spill] sm:$0xff] }
 0x3b8   :  { %1435 = vmatpush.msra.mxu0 %v2658_v28  ;;  %1455 = vmatpush.msrb.mxu1 %v2661_v29 }
 0x3b9   :  { %1475 = vmatpush.msrb.mxu2 %v3222_v53  ;;  %1495 = vmatpush.msrb.mxu3 %v3223_v5 }
 0x3ba   :  { %1436 = vmatpush.msra.mxu0 %v3224_v59  ;;  %1456 = vmatpush.msrb.mxu1 %v3225_v63 }
 0x3bb   :  { %1476 = vmatpush.msrb.mxu2 %v3226_v60  ;;  %1496 = vmatpush.msrb.mxu3 %v3227_v2 }
 0x3bc   :  { %1437 = vmatpush.msra.mxu0 %v3228_v0  ;;  %1457 = vmatpush.msrb.mxu1 %v3229_v44 }
 0x3bd   :  { %1477 = vmatpush.msrb.mxu2 %v3230_v61  ;;  %1497 = vmatpush.msrb.mxu3 %v3231_v54 }
 0x3be   :  { %1438 = vmatpush.msra.mxu0 %v3232_v4  ;;  %1458 = vmatpush.msrb.mxu1 %v3233_v18 }
 0x3bf   :  { %1478 = vmatpush.msrb.mxu2 %v3234_v6  ;;  %1498 = vmatpush.msrb.mxu3 %v3235_v62 }
 0x3c0   :  { %1439 = vmatpush.msra.mxu0 %v3236_v8  ;;  %1459 = vmatpush.msrb.mxu1 %v3237_v55 }
 0x3c1   :  { %1479 = vmatpush.msrb.mxu2 %v3238_v3  ;;  %1499 = vmatpush.msrb.mxu3 %v3239_v37 }
 0x3c2   :  { %1440 = vmatpush.msra.mxu0 %v3240_v31  ;;  %1460 = vmatpush.msrb.mxu1 %v3241_v41 }
 0x3c3   :  { %1480 = vmatpush.msrb.mxu2 %v3242_v1  ;;  %1500 = vmatpush.msrb.mxu3 %v3243_v50  ;;  %v3252_v50 = vld [vmem:[#allocation32_spill] sm:$0xff] }
 0x3c4   :  { %1441 = vmatpush.msra.mxu0 %v3244_v51  ;;  %1461 = vmatpush.msrb.mxu1 %v3245_v7  ;;  %v3253_v7 = vld [vmem:[#allocation53_spill] sm:$0xff] }
 0x3c5   :  { %1481 = vmatpush.msrb.mxu2 %v3246_v56  ;;  %1501 = vmatpush.msrb.mxu3 %v3247_v58 }
 0x421   :  { %v1135_v36 = vpop.f32.mrf.mxu0  ;;  %v1155_v57 = vpop.f32.mrf.mxu1 }
 0x422   :  { %v1198_v21 = vadd.f32 %v1135_v36, %v3248_v16  ;;  %v1199_v23 = vadd.f32 %v1155_v57, %v3249_v22  ;;  %v3254_v16 = vld [vmem:[#allocation54_spill] sm:$0xff] }
 0x424   :  { %v1673_v24 = vmul.f32 -1.442695, %v1198_v21  ;;  %v1674_v25 = vmul.f32 -1.442695, %v1199_v23 }
 0x426   :  { %1769 = vpow2.f32 %v1673_v24 }
 0x427   :  { %1771 = vpow2.f32 %v1674_v25 }
 0x428   :  { %v1195_v26 = vpop.f32.mrf.mxu3  ;;  %v1175_v33 = vpop.f32.mrf.mxu2 }
 0x429   :  { %v1201_v28 = vadd.f32 %v1195_v26, %v3250_v27  ;;  %v1200_v17 = vadd.f32 %v1175_v33, %v3251_v20 }
 0x42b   :  { %v1675_v29 = vmul.f32 -1.442695, %v1201_v28 }
 0x42c   :  { %v1770_v43 = vpop.eup %1769 }
 0x42d   :  { %v1772_v10 = vpop.eup %1771  ;;  %v1205_v30 = vadd.f32 1.0, %v1770_v43  ;;  %1773 = vpow2.f32 %v1675_v29 }
 0x42e   :  { %v1224_v32 = vadd.f32 1.0, %v1772_v10  ;;  %v3255_v10 = vld [vmem:[#allocation56_spill] sm:$0xff] }
 0x42f   :  { %1775 = vrcp.f32 %v1205_v30  ;;  %v1217_v19 = vand.u32 2147483648, %v1205_v30  ;;  %v1215_v9 = vand.u32 2147483647, %v1205_v30  ;;  %vm1211_vm4 = vweird.f32 %v1205_v30 }
 0x430   :  { %1777 = vrcp.f32 %v1224_v32  ;;  %v1236_v13 = vand.u32 2147483648, %v1224_v32  ;;  %v1234_v46 = vand.u32 2147483647, %v1224_v32  ;;  %vm1230_vm5 = vweird.f32 %v1224_v32 }
 0x431   :  { %v1218_v34 = vor.u32 1.1754944e-38, %v1217_v19  ;;  %vm1216_vm8 = vcmp.eq.f32.partialorder %v1215_v9, 8.507059e+37 }
 0x432   :  { %v1237_v5 = vor.u32 1.1754944e-38, %v1236_v13  ;;  %vm1235_vm9 = vcmp.eq.f32.partialorder %v1234_v46, 8.507059e+37 }
 0x433   :  { %v1774_v38 = vpop.eup %1773 }
 0x434   :  { %v1244_v12 = vadd.f32 1.0, %v1774_v38 }
 0x435   :  { %v1776_v35 = vpop.eup %1775 }
 0x436   :  { %v1778_v15 = vpop.eup %1777  ;;  %v1207_v49 = vmul.f32 %v1776_v35, %v1205_v30  ;;  %1779 = vrcp.f32 %v1244_v12  ;;  %vm1212_vm2 = vweird.f32 %v1776_v35  ;;  %v1256_v62 = vand.u32 2147483648, %v1244_v12 }
 0x437   :  { %v1226_v47 = vmul.f32 %v1778_v15, %v1224_v32  ;;  %1781 = vtanh.f32 %v1200_v17  ;;  %vm1231_vm3 = vweird.f32 %v1778_v15  ;;  %vm1213_vm6 = vmor %vm1211_vm4, %vm1212_vm2  ;;  %vm1250_vm11 = vweird.f32 %v1244_v12 }
 0x438   :  { %v1208_v45 = vsub.f32 1.0, %v1207_v49  ;;  %vm1232_vm7 = vmor %vm1230_vm5, %vm1231_vm3  ;;  %v1254_v8 = vand.u32 2147483647, %v1244_v12  ;;  %v1257_v3 = vor.u32 1.1754944e-38, %v1256_v62 }
 0x439   :  { %v1227_v14 = vsub.f32 1.0, %v1226_v47 }
 0x43a   :  { %v1209_v52 = vmul.f32 %v1776_v35, %v1208_v45  ;;  %vm1255_vm13 = vcmp.eq.f32.partialorder %v1254_v8, 8.507059e+37  ;;  %v1587_v8 = vld [vmem:[%s2962_s3 + $0x70] sm:$0xff] }
 0x43b   :  { %v1228_v48 = vmul.f32 %v1778_v15, %v1227_v14 }
 0x43c   :  { %v1780_v39 = vpop.eup %1779  ;;  %v1210_v11 = vadd.f32 %v1776_v35, %v1209_v52 }
 0x43d   :  { %v1229_v42 = vadd.f32 %v1778_v15, %v1228_v48  ;;  %v1246_v53 = vmul.f32 %v1780_v39, %v1244_v12  ;;  %v1782_v63 = vpop.eup %1781  ;;  %vm1251_vm10 = vweird.f32 %v1780_v39 }
 0x43e   :  { %v1214_v59 = vsel %vm1213_vm6, %v1776_v35, %v1210_v11  ;;  %vm1252_vm12 = vmor %vm1250_vm11, %vm1251_vm10 }
 0x43f   :  { %v1219_v60 = vsel %vm1216_vm8, %v1218_v34, %v1214_v59  ;;  %v1233_v2 = vsel %vm1232_vm7, %v1778_v15, %v1229_v42  ;;  %v1247_v0 = vsub.f32 1.0, %v1246_v53 }
 0x440   :  { %v1238_v44 = vsel %vm1235_vm9, %v1237_v5, %v1233_v2  ;;  %v1261_v61 = vmul.f32 %v1782_v63, %v1219_v60 }
 0x441   :  { %v1260_v54 = vmul.f32 %v1238_v44, %v2819_v40  ;;  %v1248_v4 = vmul.f32 %v1780_v39, %v1247_v0 }
 0x443   :  { %v2891_v18 = vadd.f32 %v1261_v61, %v1260_v54  ;;  %v1249_v6 = vadd.f32 %v1780_v39, %v1248_v4 }
 0x445   :  { %1783 = vtanh.f32 %v2891_v18  ;;  %v1253_v55 = vsel %vm1252_vm12, %v1780_v39, %v1249_v6 }
 0x446   :  { %v1258_v31 = vsel %vm1255_vm13, %v1257_v3, %v1253_v55  ;;  %v1586_v55 = vld [vmem:[%s2962_s3 + $0x68] sm:$0xff]  ;;  %v1585_v3 = vld [vmem:[%s2962_s3 + $0x60] sm:$0xff] }
 0x44b   :  { %v1784_v37 = vpop.eup %1783 }
 0x44c   :  { %v1264_v41 = vmul.f32 %v1784_v37, %v1258_v31  ;;  %v1584_v37 = vld [vmem:[%s2962_s3 + $0x58] sm:$0xff]  ;;  %v1583_v31 = vld [vmem:[%s2962_s3 + $0x50] sm:$0xff] }
 0x44e   :  { %1288 = vmatmul.f32.vlgmr.msrb.gmra.mxu0 %v1264_v41  ;;  %1308 = vmatmul.f32.vlgmr.msra.gmra.mxu1 %v1264_v41 }
 0x44f   :  { %1328 = vmatmul.f32.vlgmr.msra.gmra.mxu2 %v1264_v41  ;;  %1348 = vmatmul.f32.vlgmr.msra.gmra.mxu3 %v1264_v41  ;;  %v1582_v41 = vld [vmem:[%s2962_s3 + $0x48] sm:$0xff] }
 0x4cb   :  { %v1289_v40 = vpop.f32.mrf.mxu0  ;;  %v1309_v1 = vpop.f32.mrf.mxu1 }
 0x4cc   :  { %v1352_v51 = vadd.f32 %v1289_v40, %v3252_v50  ;;  %v1353_v56 = vadd.f32 %v1309_v1, %v3253_v7  ;;  %v1581_v40 = vld [vmem:[%s2962_s3 + $0x40] sm:$0xff]  ;;  %v1580_v1 = vld [vmem:[%s2962_s3 + $0x38] sm:$0xff]  ;;  %v1579_v50 = vld [vmem:[%s2962_s3 + $0x30] sm:$0xff] }
 0x4ce   :  { %v1676_v58 = vmul.f32 -1.442695, %v1352_v51  ;;  %v1677_v36 = vmul.f32 -1.442695, %v1353_v56  ;;  %v3256_v56 = vld [vmem:[#allocation33_spill] sm:$0xff] }
 0x4d0   :  { %1785 = vpow2.f32 %v1676_v58 }
 0x4d1   :  { %1787 = vpow2.f32 %v1677_v36  ;;  %v3257_v36 = vld [vmem:[#allocation55_spill] sm:$0xff] }
 0x4d2   :  { %v1349_v57 = vpop.f32.mrf.mxu3  ;;  %v1329_v27 = vpop.f32.mrf.mxu2 }
 0x4d3   :  { %v1355_v21 = vadd.f32 %v1349_v57, %v3254_v16  ;;  %v1354_v30 = vadd.f32 %v1329_v27, %v3255_v10  ;;  %v1578_v16 = vld [vmem:[%s2962_s3 + $0x28] sm:$0xff] }
 0x4d4   :  { %v1574_v27 = vld [vmem:[%s2962_s3 + $0x8] sm:$0xff] }
 0x4d5   :  { %v1678_v22 = vmul.f32 -1.442695, %v1355_v21 }
 0x4d6   :  { %v1786_v23 = vpop.eup %1785 }
 0x4d7   :  { %v1788_v24 = vpop.eup %1787  ;;  %v1359_v25 = vadd.f32 1.0, %v1786_v23  ;;  %1789 = vpow2.f32 %v1678_v22  ;;  %v1577_v23 = vld [vmem:[%s2962_s3 + $0x20] sm:$0xff] }
 0x4d8   :  { %v1378_v26 = vadd.f32 1.0, %v1788_v24  ;;  %v1576_v24 = vld [vmem:[%s2962_s3 + $0x18] sm:$0xff] }
 0x4d9   :  { %1791 = vrcp.f32 %v1359_v25  ;;  %v1371_v20 = vand.u32 2147483648, %v1359_v25  ;;  %v1369_v49 = vand.u32 2147483647, %v1359_v25  ;;  %vm1365_vm0 = vweird.f32 %v1359_v25 }
 0x4da   :  { %1793 = vrcp.f32 %v1378_v26  ;;  %v1390_v17 = vand.u32 2147483648, %v1378_v26  ;;  %v1388_v45 = vand.u32 2147483647, %v1378_v26  ;;  %vm1384_vm2 = vweird.f32 %v1378_v26 }
 0x4db   :  { %v1372_v13 = vor.u32 1.1754944e-38, %v1371_v20  ;;  %vm1370_vm5 = vcmp.eq.f32.partialorder %v1369_v49, 8.507059e+37 }
 0x4dc   :  { %v1391_v48 = vor.u32 1.1754944e-38, %v1390_v17  ;;  %vm1389_vm6 = vcmp.eq.f32.partialorder %v1388_v45, 8.507059e+37 }
 0x4dd   :  { %v1790_v28 = vpop.eup %1789 }
 0x4de   :  { %v1398_v29 = vadd.f32 1.0, %v1790_v28  ;;  %v3258_v28 = vld [vmem:[#allocation57_spill] sm:$0xff] }
 0x4df   :  { %v1792_v43 = vpop.eup %1791 }
 0x4e0   :  { %v1794_v32 = vpop.eup %1793  ;;  %v1361_v33 = vmul.f32 %v1792_v43, %v1359_v25  ;;  %1795 = vrcp.f32 %v1398_v29  ;;  %vm1366_vm14 = vweird.f32 %v1792_v43  ;;  %v1410_v0 = vand.u32 2147483648, %v1398_v29  ;;  %v1575_v25 = vld [vmem:[%s2962_s3 + $0x10] sm:$0xff] }
 0x4e1   :  { %v1380_v38 = vmul.f32 %v1794_v32, %v1378_v26  ;;  %1797 = vtanh.f32 %v1354_v30  ;;  %vm1385_vm15 = vweird.f32 %v1794_v32  ;;  %vm1367_vm3 = vmor %vm1365_vm0, %vm1366_vm14  ;;  %vm1404_vm8 = vweird.f32 %v1398_v29 }
 0x4e2   :  { %v1362_v12 = vsub.f32 1.0, %v1361_v33  ;;  %vm1386_vm4 = vmor %vm1384_vm2, %vm1385_vm15  ;;  %v1408_v44 = vand.u32 2147483647, %v1398_v29  ;;  %v1411_v54 = vor.u32 1.1754944e-38, %v1410_v0 }
 0x4e3   :  { %v1381_v35 = vsub.f32 1.0, %v1380_v38 }
 0x4e4   :  { %v1363_v15 = vmul.f32 %v1792_v43, %v1362_v12  ;;  %vm1409_vm10 = vcmp.eq.f32.partialorder %v1408_v44, 8.507059e+37 }
 0x4e5   :  { %v1382_v47 = vmul.f32 %v1794_v32, %v1381_v35 }
 0x4e6   :  { %v1796_v14 = vpop.eup %1795  ;;  %v1364_v19 = vadd.f32 %v1792_v43, %v1363_v15  ;;  %v3259_v15 = vld [vmem:[#allocation58_spill] sm:$0xff] }
 0x4e7   :  { %v1383_v52 = vadd.f32 %v1794_v32, %v1382_v47  ;;  %v1400_v9 = vmul.f32 %v1796_v14, %v1398_v29  ;;  %v1798_v39 = vpop.eup %1797  ;;  %vm1405_vm7 = vweird.f32 %v1796_v14 }
 0x4e8   :  { %v1368_v46 = vsel %vm1367_vm3, %v1792_v43, %v1364_v19  ;;  %vm1406_vm9 = vmor %vm1404_vm8, %vm1405_vm7  ;;  %v1573_v43 = vld [vmem:[%s2962_s3] sm:$0xff] }
 0x4e9   :  { %v1373_v11 = vsel %vm1370_vm5, %v1372_v13, %v1368_v46  ;;  %v1387_v34 = vsel %vm1386_vm4, %v1794_v32, %v1383_v52  ;;  %v1401_v42 = vsub.f32 1.0, %v1400_v9 }
 0x4ea   :  { %v1392_v53 = vsel %vm1389_vm6, %v1391_v48, %v1387_v34  ;;  %v1415_v5 = vmul.f32 %v1798_v39, %v1373_v11 }
 0x4eb   :  { %v1414_v59 = vmul.f32 %v1392_v53, %v2891_v18  ;;  %v1402_v63 = vmul.f32 %v1796_v14, %v1401_v42  ;;  %v1588_v18 = vld [vmem:[%s2962_s3 + $0x78] sm:$0xff] }
 0x4ec   :  { %1589 = vmatpush.msrb.mxu0 %v1588_v18 }
 0x4ed   :  { %v2899_v60 = vadd.f32 %v1415_v5, %v1414_v59  ;;  %v1403_v2 = vadd.f32 %v1796_v14, %v1402_v63 }
 0x4ee   :  { %1590 = vmatpush.msrb.mxu0 %v1587_v8 }
 0x4ef   :  { %1799 = vtanh.f32 %v2899_v60  ;;  %v1407_v61 = vsel %vm1406_vm9, %v1796_v14, %v1403_v2 }
 0x4f0   :  { %v1412_v6 = vsel %vm1409_vm10, %v1411_v54, %v1407_v61  ;;  %1591 = vmatpush.msrb.mxu0 %v1586_v55 }
 0x4f2   :  { %1592 = vmatpush.msrb.mxu0 %v1585_v3 }
 0x4f4   :  { %1593 = vmatpush.msrb.mxu0 %v1584_v37 }
 0x4f5   :  { %v1800_v4 = vpop.eup %1799 }
 0x4f6   :  { %v1418_v62 = vmul.f32 %v1800_v4, %v1412_v6  ;;  %1594 = vmatpush.msrb.mxu0 %v1583_v31 }
 0x4f8   :  { %1442 = vmatmul.f32.vlgmr.msra.gmra.mxu0 %v1418_v62  ;;  %1462 = vmatmul.f32.vlgmr.msrb.gmra.mxu1 %v1418_v62 }
 0x4f9   :  { %1482 = vmatmul.f32.vlgmr.msrb.gmra.mxu2 %v1418_v62  ;;  %1502 = vmatmul.f32.vlgmr.msrb.gmra.mxu3 %v1418_v62 }
 0x4fa   :  { %1595 = vmatpush.msrb.mxu0 %v1582_v41 }
 0x4fc   :  { %1596 = vmatpush.msrb.mxu0 %v1581_v40 }
 0x4fe   :  { %1597 = vmatpush.msrb.mxu0 %v1580_v1 }
 0x500   :  { %1598 = vmatpush.msrb.mxu0 %v1579_v50 }
 0x502   :  { %1599 = vmatpush.msrb.mxu0 %v1578_v16 }
 0x504   :  { %1600 = vmatpush.msrb.mxu0 %v1577_v23 }
 0x506   :  { %1601 = vmatpush.msrb.mxu0 %v1576_v24 }
 0x508   :  { %1602 = vmatpush.msrb.mxu0 %v1575_v25 }
 0x50a   :  { %1603 = vmatpush.msrb.mxu0 %v1574_v27 }
 0x50c   :  { %1604 = vmatpush.msrb.mxu0 %v1573_v43 }
 0x575   :  { %v1443_v51 = vpop.f32.mrf.mxu0  ;;  %v1463_v7 = vpop.f32.mrf.mxu1 }
 0x576   :  { %v1506_v58 = vadd.f32 %v1443_v51, %v3256_v56  ;;  %v1507_v57 = vadd.f32 %v1463_v7, %v3257_v36 }
 0x578   :  { %v1679_v21 = vmul.f32 -1.442695, %v1506_v58  ;;  %v1680_v22 = vmul.f32 -1.442695, %v1507_v57 }
 0x57a   :  { %1801 = vpow2.f32 %v1679_v21 }
 0x57b   :  { %1803 = vpow2.f32 %v1680_v22 }
 0x57c   :  { %v1503_v26 = vpop.f32.mrf.mxu3  ;;  %v1483_v12 = vpop.f32.mrf.mxu2 }
 0x57d   :  { %v1509_v29 = vadd.f32 %v1503_v26, %v3258_v28  ;;  %v1508_v49 = vadd.f32 %v1483_v12, %v3259_v15 }
 0x57f   :  { %v1681_v10 = vmul.f32 -1.442695, %v1509_v29 }
 0x580   :  { %v1802_v30 = vpop.eup %1801 }
 0x581   :  { %v1804_v32 = vpop.eup %1803  ;;  %v1513_v33 = vadd.f32 1.0, %v1802_v30  ;;  %1805 = vpow2.f32 %v1681_v10 }
 0x582   :  { %v1532_v38 = vadd.f32 1.0, %v1804_v32 }
 0x583   :  { %1807 = vrcp.f32 %v1513_v33  ;;  %v1525_v52 = vand.u32 2147483648, %v1513_v33  ;;  %v1523_v46 = vand.u32 2147483647, %v1513_v33  ;;  %vm1519_vm13 = vweird.f32 %v1513_v33 }
 0x584   :  { %1809 = vrcp.f32 %v1532_v38  ;;  %v1544_v9 = vand.u32 2147483648, %v1532_v38  ;;  %v1542_v11 = vand.u32 2147483647, %v1532_v38  ;;  %vm1538_vm14 = vweird.f32 %v1532_v38 }
 0x585   :  { %v1526_v53 = vor.u32 1.1754944e-38, %v1525_v52  ;;  %vm1524_vm2 = vcmp.eq.f32.partialorder %v1523_v46, 8.507059e+37 }
 0x586   :  { %v1545_v63 = vor.u32 1.1754944e-38, %v1544_v9  ;;  %vm1543_vm3 = vcmp.eq.f32.partialorder %v1542_v11, 8.507059e+37 }
 0x587   :  { %v1806_v35 = vpop.eup %1805 }
 0x588   :  { %v1552_v20 = vadd.f32 1.0, %v1806_v35 }
 0x589   :  { %v1808_v17 = vpop.eup %1807 }
 0x58a   :  { %v1810_v47 = vpop.eup %1809  ;;  %v1515_v45 = vmul.f32 %v1808_v17, %v1513_v33  ;;  %1811 = vrcp.f32 %v1552_v20  ;;  %vm1520_vm11 = vweird.f32 %v1808_v17  ;;  %v1564_v3 = vand.u32 2147483648, %v1552_v20 }
 0x58b   :  { %v1534_v14 = vmul.f32 %v1810_v47, %v1532_v38  ;;  %1813 = vtanh.f32 %v1508_v49  ;;  %vm1539_vm12 = vweird.f32 %v1810_v47  ;;  %vm1521_vm15 = vmor %vm1519_vm13, %vm1520_vm11  ;;  %vm1558_vm5 = vweird.f32 %v1552_v20 }
 0x58c   :  { %v1516_v19 = vsub.f32 1.0, %v1515_v45  ;;  %vm1540_vm0 = vmor %vm1538_vm14, %vm1539_vm12  ;;  %v1562_v37 = vand.u32 2147483647, %v1552_v20  ;;  %v1565_v41 = vor.u32 1.1754944e-38, %v1564_v3 }
 0x58d   :  { %v1535_v13 = vsub.f32 1.0, %v1534_v14 }
 0x58e   :  { %v1517_v48 = vmul.f32 %v1808_v17, %v1516_v19  ;;  %vm1563_vm7 = vcmp.eq.f32.partialorder %v1562_v37, 8.507059e+37 }
 0x58f   :  { %v1536_v39 = vmul.f32 %v1810_v47, %v1535_v13 }
 0x590   :  { %v1812_v34 = vpop.eup %1811  ;;  %v1518_v42 = vadd.f32 %v1808_v17, %v1517_v48 }
 0x591   :  { %v1537_v5 = vadd.f32 %v1810_v47, %v1536_v39  ;;  %v1554_v59 = vmul.f32 %v1812_v34, %v1552_v20  ;;  %v1814_v0 = vpop.eup %1813  ;;  %vm1559_vm4 = vweird.f32 %v1812_v34 }
 0x592   :  { %v1522_v2 = vsel %vm1521_vm15, %v1808_v17, %v1518_v42  ;;  %vm1560_vm6 = vmor %vm1558_vm5, %vm1559_vm4 }
 0x593   :  { %v1527_v44 = vsel %vm1524_vm2, %v1526_v53, %v1522_v2  ;;  %v1541_v61 = vsel %vm1540_vm0, %v1810_v47, %v1537_v5  ;;  %v1555_v54 = vsub.f32 1.0, %v1554_v59 }
 0x594   :  { %v1546_v4 = vsel %vm1543_vm3, %v1545_v63, %v1541_v61  ;;  %v1569_v6 = vmul.f32 %v1814_v0, %v1527_v44 }
 0x595   :  { %v1568_v62 = vmul.f32 %v1546_v4, %v2899_v60  ;;  %v1556_v18 = vmul.f32 %v1812_v34, %v1555_v54 }
 0x597   :  { %v1570_v8 = vadd.f32 %v1569_v6, %v1568_v62  ;;  %v1557_v55 = vadd.f32 %v1812_v34, %v1556_v18 }
 0x599   :  { %1815 = vtanh.f32 %v1570_v8  ;;  %v1561_v31 = vsel %vm1560_vm6, %v1812_v34, %v1557_v55 }
 0x59a   :  { %v1566_v1 = vsel %vm1563_vm7, %v1565_v41, %v1561_v31 }
 0x59f   :  { %v1816_v40 = vpop.eup %1815 }
 0x5a0   :  { %v1572_v50 = vmul.f32 %v1816_v40, %v1566_v1 }
 0x5a2   :  { %1605 = vmatmul.f32.vlgmr.msrb.gmra.mxu0 %v1572_v50 }
 0x61f   :  { %v1606_v51 = vpop.f32.mrf.mxu0 }
 0x620   :  { %1609 = vst.msk [vmem:[%s2963_s4] sm:$0xff] %vm47_vm1, %v1606_v51 }
 0x621   :  { %1614 = vsyncpa [#allocation4], 1 }

</bundles_post_ra>
